<compile_context>
chip_gen: v5e
topology: v5e:2x2
jax: 0.10.0
libtpu: 0.0.40
codegen_flags: <defaults>
</compile_context>

<pallas_src>
import jax
import jax.numpy as jnp
from jax.experimental import pallas as pl
from jax.experimental.pallas import tpu as pltpu

IMG_C, IMG_H, IMG_W = 3, 32, 32
INPUT_DIM = IMG_C * IMG_H * IMG_W   # 3072, matches Encoder.input_dim / Decoder.output_dim
LATENT_DIM = 128                    # latent width (lane-aligned)


def _autoencoder_kernel(x_ref, we_ref, be_ref, wd_ref, bd_ref, o_ref):
    """Fused encode->decode:  x_hat = (x @ We + be) @ Wd + bd."""
    x = x_ref[...]                                             # (TM, 3072) bf16
    # ---- encode: z = x @ We + be  (bf16 MXU matmul, f32 accumulate) ----
    z = jnp.dot(x, we_ref[...], preferred_element_type=jnp.float32)
    z = z + be_ref[...]                                        # (TM, LATENT) f32
    # Re-cast to bf16 so the decode matmul stays on the bf16 MXU fast path.
    z = z.astype(jnp.bfloat16)
    # ---- decode: x_hat = z @ Wd + bd ----
    x_hat = jnp.dot(z, wd_ref[...], preferred_element_type=jnp.float32)
    x_hat = x_hat + bd_ref[...]                                # (TM, 3072) f32
    o_ref[...] = x_hat.astype(o_ref.dtype)


def _round_up(n, m):
    return ((n + m - 1) // m) * m


def autoencoder_forward(x_nchw, w_enc, b_enc, w_dec, b_dec, *, tile_m=None):
    """x_nchw: (B, 3, 32, 32) float32 -> reconstructed (B, 3, 32, 32) float32."""
    B = x_nchw.shape[0]

    # Batch-tile size: fill the MXU for large batches (bigger tiles amortize
    # the ~0.35us per-step overhead); for small batches use one sublane-aligned
    # tile covering the whole (padded) batch so there is zero pad waste.
    if tile_m is None:
        if B >= 512:
            tile_m = 512
        elif B >= 256:
            tile_m = 256
        else:
            tile_m = _round_up(max(B, 8), 8)
    b_pad = _round_up(B, tile_m)
    n_tiles = b_pad // tile_m

    # Flatten NCHW row-major and cast activations/weights to bf16
    # (f32 accumulate inside the kernel keeps precision).
    x2d = x_nchw.reshape(B, INPUT_DIM).astype(jnp.bfloat16)
    if b_pad != B:
        x2d = jnp.pad(x2d, ((0, b_pad - B), (0, 0)))
    w_enc_bf = w_enc.astype(jnp.bfloat16)
    w_dec_bf = w_dec.astype(jnp.bfloat16)
    b_enc2d = b_enc.reshape(1, LATENT_DIM).astype(jnp.float32)
    b_dec2d = b_dec.reshape(1, INPUT_DIM).astype(jnp.float32)

    flops = 2 * b_pad * INPUT_DIM * LATENT_DIM * 2            # encode + decode
    bytes_accessed = (
        x2d.size * 2                                           # bf16 input
        + w_enc_bf.size * 2 + w_dec_bf.size * 2                # bf16 weights
        + b_enc2d.size * 4 + b_dec2d.size * 4                  # f32 biases
        + b_pad * INPUT_DIM * 4                                # f32 output
    )

    out = pl.pallas_call(
        _autoencoder_kernel,
        out_shape=jax.ShapeDtypeStruct((b_pad, INPUT_DIM), jnp.float32),
        grid_spec=pltpu.PrefetchScalarGridSpec(
            num_scalar_prefetch=0,
            grid=(n_tiles,),
            in_specs=[
                pl.BlockSpec((tile_m, INPUT_DIM), lambda i: (i, 0)),       # x tile
                pl.BlockSpec((INPUT_DIM, LATENT_DIM), lambda i: (0, 0)),   # We (resident)
                pl.BlockSpec((1, LATENT_DIM), lambda i: (0, 0)),           # be (resident)
                pl.BlockSpec((LATENT_DIM, INPUT_DIM), lambda i: (0, 0)),   # Wd (resident)
                pl.BlockSpec((1, INPUT_DIM), lambda i: (0, 0)),            # bd (resident)
            ],
            out_specs=pl.BlockSpec((tile_m, INPUT_DIM), lambda i: (i, 0)),
        ),
        compiler_params=pltpu.CompilerParams(
            dimension_semantics=("parallel",),                 # lets v7x use both TCs
            vmem_limit_bytes=64 * 1024 * 1024,
        ),
        cost_estimate=pl.CostEstimate(
            flops=flops, transcendentals=0, bytes_accessed=bytes_accessed),
    )(x2d, w_enc_bf, b_enc2d, w_dec_bf, b_dec2d)

    return out[:B].reshape(B, IMG_C, IMG_H, IMG_W)


def _reference(x_nchw, w_enc, b_enc, w_dec, b_dec):
    """Pure-JAX reference using the same bf16 weight/activation precision."""
    B = x_nchw.shape[0]
    x2d = x_nchw.reshape(B, INPUT_DIM).astype(jnp.bfloat16)
    z = jnp.dot(x2d, w_enc.astype(jnp.bfloat16),
                preferred_element_type=jnp.float32) + b_enc
    z = z.astype(jnp.bfloat16)
    x_hat = jnp.dot(z, w_dec.astype(jnp.bfloat16),
                    preferred_element_type=jnp.float32) + b_dec
    return x_hat.reshape(B, IMG_C, IMG_H, IMG_W)


if __name__ == "__main__":
    key = jax.random.PRNGKey(0)
    k_x, k_we, k_be, k_wd, k_bd = jax.random.split(key, 5)

    B = 8  # small batch, sublane-aligned
    x = jax.random.normal(k_x, (B, IMG_C, IMG_H, IMG_W), dtype=jnp.float32)

    # Deterministic parameter init (Kaiming-uniform-ish scaling).
    w_enc = jax.random.uniform(k_we, (INPUT_DIM, LATENT_DIM), jnp.float32,
                               minval=-1.0, maxval=1.0) / jnp.sqrt(INPUT_DIM)
    b_enc = jax.random.uniform(k_be, (LATENT_DIM,), jnp.float32,
                               minval=-1.0, maxval=1.0) / jnp.sqrt(INPUT_DIM)
    w_dec = jax.random.uniform(k_wd, (LATENT_DIM, INPUT_DIM), jnp.float32,
                               minval=-1.0, maxval=1.0) / jnp.sqrt(LATENT_DIM)
    b_dec = jax.random.uniform(k_bd, (INPUT_DIM,), jnp.float32,
                               minval=-1.0, maxval=1.0) / jnp.sqrt(LATENT_DIM)

    x_hat = autoencoder_forward(x, w_enc, b_enc, w_dec, b_dec)
    x_hat = jax.block_until_ready(x_hat)

    # Correctness check vs. pure-JAX reference (same bf16 precision).
    x_ref = _reference(x, w_enc, b_enc, w_dec, b_dec)
    assert x_hat.shape == (B, IMG_C, IMG_H, IMG_W)
    assert jnp.allclose(x_hat, x_ref, atol=2e-2, rtol=2e-2), (
        float(jnp.max(jnp.abs(x_hat - x_ref))))

    print("KERNEL_OK")
</pallas_src>

<mosaic_0001>
module attributes {stable_mosaic.version = 11 : i64} {
  func.func @_autoencoder_kernel(%arg0: i32, %arg1: memref<8x3072xbf16, #tpu.memory_space<vmem>>, %arg2: memref<3072x128xbf16, #tpu.memory_space<vmem>>, %arg3: memref<1x128xf32, #tpu.memory_space<vmem>>, %arg4: memref<128x3072xbf16, #tpu.memory_space<vmem>>, %arg5: memref<1x3072xf32, #tpu.memory_space<vmem>>, %arg6: memref<8x3072xf32, #tpu.memory_space<vmem>>) attributes {dimension_semantics = [#tpu.dimension_semantics<parallel>], iteration_bounds = array<i64: 1>, scalar_prefetch = 0 : i64, scratch_operands = 0 : i64, tpu.core_type = #tpu.core_type<tc>, window_params = [{transform_indices = @transform_0, window_bounds = array<i64: 8, 3072>}, {pipeline_mode = #tpu.pipeline_mode<synchronous>, transform_indices = @transform_1, window_bounds = array<i64: 3072, 128>}, {pipeline_mode = #tpu.pipeline_mode<synchronous>, transform_indices = @transform_2, window_bounds = array<i64: 1, 128>}, {pipeline_mode = #tpu.pipeline_mode<synchronous>, transform_indices = @transform_3, window_bounds = array<i64: 128, 3072>}, {pipeline_mode = #tpu.pipeline_mode<synchronous>, transform_indices = @transform_4, window_bounds = array<i64: 1, 3072>}, {transform_indices = @transform_5, window_bounds = array<i64: 8, 3072>}]} {
    %c0 = arith.constant 0 : index
    %c0_0 = arith.constant 0 : index
    %0 = vector.load %arg1[%c0, %c0_0] : memref<8x3072xbf16, #tpu.memory_space<vmem>>, vector<8x3072xbf16>
    %c0_1 = arith.constant 0 : index
    %c0_2 = arith.constant 0 : index
    %1 = vector.load %arg2[%c0_1, %c0_2] : memref<3072x128xbf16, #tpu.memory_space<vmem>>, vector<3072x128xbf16>
    %cst = arith.constant dense<0.000000e+00> : vector<8x128xf32>
    %2 = tpu.matmul %0, %1, %cst {dimension_numbers = #tpu.dot_dimension_numbers<[1], [0], [0], [1], [0, 0, 1, 1], [], []>} : vector<8x3072xbf16>, vector<3072x128xbf16>, vector<8x128xf32> -> vector<8x128xf32>
    %c0_3 = arith.constant 0 : index
    %c0_4 = arith.constant 0 : index
    %3 = vector.load %arg3[%c0_3, %c0_4] : memref<1x128xf32, #tpu.memory_space<vmem>>, vector<1x128xf32>
    %4 = vector.broadcast %3 : vector<1x128xf32> to vector<8x128xf32>
    %5 = arith.addf %2, %4 : vector<8x128xf32>
    %6 = arith.truncf %5 : vector<8x128xf32> to vector<8x128xbf16>
    %c0_5 = arith.constant 0 : index
    %c0_6 = arith.constant 0 : index
    %7 = vector.load %arg4[%c0_5, %c0_6] : memref<128x3072xbf16, #tpu.memory_space<vmem>>, vector<128x3072xbf16>
    %cst_7 = arith.constant dense<0.000000e+00> : vector<8x3072xf32>
    %8 = tpu.matmul %6, %7, %cst_7 {dimension_numbers = #tpu.dot_dimension_numbers<[1], [0], [0], [1], [0, 0, 1, 1], [], []>} : vector<8x128xbf16>, vector<128x3072xbf16>, vector<8x3072xf32> -> vector<8x3072xf32>
    %c0_8 = arith.constant 0 : index
    %c0_9 = arith.constant 0 : index
    %9 = vector.load %arg5[%c0_8, %c0_9] : memref<1x3072xf32, #tpu.memory_space<vmem>>, vector<1x3072xf32>
    %10 = vector.broadcast %9 : vector<1x3072xf32> to vector<8x3072xf32>
    %11 = arith.addf %8, %10 : vector<8x3072xf32>
    %c0_10 = arith.constant 0 : index
    %c0_11 = arith.constant 0 : index
    %12 = vector.load %arg6[%c0_10, %c0_11] : memref<8x3072xf32, #tpu.memory_space<vmem>>, vector<8x3072xf32>
    tpu.vector_store %arg6[%c0_10, %c0_11], %11 {strides = array<i32>} : memref<8x3072xf32, #tpu.memory_space<vmem>>, vector<8x3072xf32>,
    return
  }
  func.func @transform_0(%arg0: i32) -> (i32, i32) {
    %c0_i32 = arith.constant 0 : i32
    %c0_i32_0 = arith.constant 0 : i32
    return %arg0, %c0_i32 : i32, i32
  }
  func.func @transform_1(%arg0: i32) -> (i32, i32) {
    %c0_i32 = arith.constant 0 : i32
    %c0_i32_0 = arith.constant 0 : i32
    %c0_i32_1 = arith.constant 0 : i32
    return %c0_i32, %c0_i32_0 : i32, i32
  }
  func.func @transform_2(%arg0: i32) -> (i32, i32) {
    %c0_i32 = arith.constant 0 : i32
    %c0_i32_0 = arith.constant 0 : i32
    %c0_i32_1 = arith.constant 0 : i32
    return %c0_i32, %c0_i32_0 : i32, i32
  }
  func.func @transform_3(%arg0: i32) -> (i32, i32) {
    %c0_i32 = arith.constant 0 : i32
    %c0_i32_0 = arith.constant 0 : i32
    %c0_i32_1 = arith.constant 0 : i32
    return %c0_i32, %c0_i32_0 : i32, i32
  }
  func.func @transform_4(%arg0: i32) -> (i32, i32) {
    %c0_i32 = arith.constant 0 : i32
    %c0_i32_0 = arith.constant 0 : i32
    %c0_i32_1 = arith.constant 0 : i32
    return %c0_i32, %c0_i32_0 : i32, i32
  }
  func.func @transform_5(%arg0: i32) -> (i32, i32) {
    %c0_i32 = arith.constant 0 : i32
    %c0_i32_0 = arith.constant 0 : i32
    return %arg0, %c0_i32 : i32, i32
  }
}

</mosaic_0001>

<bundles_post_ra>
// kernel: tpu_custom_call.1
= control target key start
LH: loop header
LB: loop body
LE: loop exit
PB: predicated region body
PF: predicated region fallthrough
CT: control target
= control target key end

     0   :  { %10 = vsyncpa [#allocation3], 0  ;;  %s5746_s0 = inlined_call_operand.hbm [shape: bf16[8,3072], index: 0, kind: input, shape index: {}]   ;;  %s5747_s1 = inlined_call_operand.hbm [shape: bf16[3072,128], index: 1, kind: input, shape index: {}]   ;;  %s5748_s2 = inlined_call_operand.vmem [shape: f32[1,128], index: 2, kind: input, shape index: {}]   ;;  %s5749_s3 = inlined_call_operand.hbm [shape: bf16[128,3072], index: 3, kind: input, shape index: {}]   ;;  %s5750_s4 = inlined_call_operand.hbm [shape: f32[1,3072], index: 4, kind: input, shape index: {}]   ;;  %s5751_s5 = inlined_call_operand.hbm [shape: f32[8,3072], index: 5, kind: output, shape index: {}]  }
   0x1   :  { %11 = vsyncpa [#allocation6], 0 }
   0x2   :  { %12 = vsyncpa [#allocation9], 0  ;;  %s29_s20 = sshll.u32 %s5747_s1, 4  ;;  %s30_s20 = int_to_ptr.hbm [resolvable:$true] %s29_s20 }
   0x3   :  { %13 = vsyncpa [#allocation4], 0  ;;  %s5648_s21 = smov [#allocation5]   ;;  %s19_s25 = sshll.u32 %s5746_s0, 4  ;;  %s20_s25 = int_to_ptr.hbm [resolvable:$true] %s19_s25 }
   0x4   :  { %s31_s22 = sshll.u32 %s5648_s21, 4  ;;  %s5649_s26 = smov 64   ;;  %s32_s22 = int_to_ptr.vmem [resolvable:$true] %s31_s22 }
   0x5   :  { %s5650_s27 = smov 4   ;;  %s5651_s28 = smov [#allocation2]  }
   0x6   :  { %37 = dma.hbm_to_vmem [thread:$0]  %s30_s20, 24576, %s32_s22, [#allocation6], %s5649_s26, %s5649_s26, %s5650_s27  }
   0x7   :  { %s21_s29 = sshll.u32 %s5651_s28, 4  ;;  %s44_s7 = sshll.u32 %s5749_s3, 4  ;;  %s22_s29 = int_to_ptr.vmem [resolvable:$true] %s21_s29  ;;  %s45_s7 = int_to_ptr.hbm [resolvable:$true] %s44_s7 }
   0x8   :  { %24 = dma.hbm_to_vmem [thread:$0]  %s20_s25, 1536, %s22_s29, [#allocation3]  }
   0x9   :  { %s5652_s1 = smov [#allocation7]   ;;  %s58_s0 = sshll.u32 %s5750_s4, 4  ;;  %s59_s0 = int_to_ptr.hbm [resolvable:$true] %s58_s0 }
   0xa   :  { %s46_s8 = sshll.u32 %s5652_s1, 4  ;;  %s5653_s11 = smov 1536   ;;  %s47_s8 = int_to_ptr.vmem [resolvable:$true] %s46_s8 }
   0xb   :  { %s5654_s12 = smov 96   ;;  %s5655_s13 = smov [#allocation8]  }
   0xc   :  { %52 = dma.hbm_to_vmem [thread:$0]  %s45_s7, 24576, %s47_s8, [#allocation6], %s5653_s11, %s5653_s11, %s5654_s12  }
   0xd   :  { %s60_s14 = sshll.u32 %s5655_s13, 4  ;;  %s61_s14 = int_to_ptr.vmem [resolvable:$true] %s60_s14 }
   0xe   :  { %63 = dma.hbm_to_vmem [thread:$0]  %s59_s0, 384, %s61_s14, [#allocation9]  }
   0xf   :  { %5640 = dma.done.wait [#allocation3], 1536  }
  0x10   :  { %5641 = vsyncadd [#allocation3], 4294965760 }
  0x11   :  { %5642 = dma.done.wait [#allocation6], 49152  }
  0x12   :  { %5643 = vsyncadd [#allocation6], 4294918144 }
  0x13   :  { %5644 = dma.done.wait [#allocation9], 384  }
  0x14   :  { %5645 = vsyncadd [#allocation9], 4294966912  ;;  %v5133_v0 = vld [vmem:[#allocation5 + $0x38] sm:$0xff]  ;;  %v5132_v4 = vld [vmem:[#allocation5 + $0x30] sm:$0xff]  ;;  %s3578_s18 = sshll.u32 %s5751_s5, 4  ;;  %s3579_s18 = int_to_ptr.hbm [resolvable:$true] %s3578_s18 }
  0x15   :  { %v5141_v1 = vld [vmem:[#allocation5 + $0x78] sm:$0xff]  ;;  %1716 = vmatpush.bf16.msra.mxu0 %v5133_v0  ;;  %v5140_v5 = vld [vmem:[#allocation5 + $0x70] sm:$0xff]  ;;  %v5131_v8 = vld [vmem:[#allocation5 + $0x28] sm:$0xff] }
  0x16   :  { %v5149_v2 = vld [vmem:[#allocation5 + $0xb8] sm:$0xff]  ;;  %1729 = vmatpush.bf16.msra.mxu1 %v5141_v1  ;;  %v5148_v6 = vld [vmem:[#allocation5 + $0xb0] sm:$0xff]  ;;  %v5139_v9 = vld [vmem:[#allocation5 + $0x68] sm:$0xff] }
  0x17   :  { %v5157_v3 = vld [vmem:[#allocation5 + $0xf8] sm:$0xff]  ;;  %1742 = vmatpush.bf16.msra.mxu2 %v5149_v2  ;;  %v5156_v7 = vld [vmem:[#allocation5 + $0xf0] sm:$0xff]  ;;  %v5147_v10 = vld [vmem:[#allocation5 + $0xa8] sm:$0xff] }
  0x18   :  { %1755 = vmatpush.bf16.msra.mxu3 %v5157_v3  ;;  %v5155_v11 = vld [vmem:[#allocation5 + $0xe8] sm:$0xff]  ;;  %v5130_v12 = vld [vmem:[#allocation5 + $0x20] sm:$0xff]  ;;  %v5129_v16 = vld [vmem:[#allocation5 + $0x18] sm:$0xff] }
  0x19   :  { %1717 = vmatpush.bf16.msra.mxu0 %v5132_v4  ;;  %v5138_v13 = vld [vmem:[#allocation5 + $0x60] sm:$0xff]  ;;  %v5137_v17 = vld [vmem:[#allocation5 + $0x58] sm:$0xff]  ;;  %v5128_v20 = vld [vmem:[#allocation5 + $0x10] sm:$0xff] }
  0x1a   :  { %1730 = vmatpush.bf16.msra.mxu1 %v5140_v5  ;;  %v5146_v14 = vld [vmem:[#allocation5 + $0xa0] sm:$0xff]  ;;  %v5145_v18 = vld [vmem:[#allocation5 + $0x98] sm:$0xff]  ;;  %v5136_v21 = vld [vmem:[#allocation5 + $0x50] sm:$0xff] }
  0x1b   :  { %1743 = vmatpush.bf16.msra.mxu2 %v5148_v6  ;;  %v5154_v15 = vld [vmem:[#allocation5 + $0xe0] sm:$0xff]  ;;  %v5153_v19 = vld [vmem:[#allocation5 + $0xd8] sm:$0xff]  ;;  %v5144_v22 = vld [vmem:[#allocation5 + $0x90] sm:$0xff] }
  0x1c   :  { %1756 = vmatpush.bf16.msra.mxu3 %v5156_v7  ;;  %v5152_v23 = vld [vmem:[#allocation5 + $0xd0] sm:$0xff]  ;;  %v5127_v24 = vld [vmem:[#allocation5 + $0x8] sm:$0xff]  ;;  %v80_v29 = vld [vmem:[#allocation2] sm:$0xff] }
  0x1d   :  { %1718 = vmatpush.bf16.msra.mxu0 %v5131_v8  ;;  %v5135_v25 = vld [vmem:[#allocation5 + $0x48] sm:$0xff]  ;;  %v5126_v30 = vld [vmem:[#allocation5] sm:$0xff]  ;;  %v492_v33 = vunpack.c.l.b16 %v80_v29  ;;  %v493_v37 = vunpack.c.h.b16 %v80_v29  ;;  %v5165_v38 = vld [vmem:[#allocation5 + $0x138] sm:$0xff] }
  0x1e   :  { %1731 = vmatpush.bf16.msra.mxu1 %v5139_v9  ;;  %v5143_v26 = vld [vmem:[#allocation5 + $0x88] sm:$0xff]  ;;  %v5134_v31 = vld [vmem:[#allocation5 + $0x40] sm:$0xff]  ;;  %v5173_v39 = vld [vmem:[#allocation5 + $0x178] sm:$0xff] }
  0x1f   :  { %1744 = vmatpush.bf16.msra.mxu2 %v5147_v10  ;;  %v5151_v27 = vld [vmem:[#allocation5 + $0xc8] sm:$0xff]  ;;  %v5142_v34 = vld [vmem:[#allocation5 + $0x80] sm:$0xff]  ;;  %v5181_v40 = vld [vmem:[#allocation5 + $0x1b8] sm:$0xff]  ;;  %v516_v43 = vpack.c.b16 %v492_v33, %v492_v33  ;;  %v517_v45 = vpack.c.b16 %v493_v37, %v493_v37 }
  0x20   :  { %1757 = vmatpush.bf16.msra.mxu3 %v5155_v11  ;;  %v81_v28 = vld [vmem:[#allocation2 + $0x8] sm:$0xff]  ;;  %v5150_v35 = vld [vmem:[#allocation5 + $0xc0] sm:$0xff]  ;;  %v5189_v41 = vld [vmem:[#allocation5 + $0x1f8] sm:$0xff] }
  0x21   :  { %1719 = vmatpush.bf16.msra.mxu0 %v5130_v12  ;;  %v494_v32 = vunpack.c.l.b16 %v81_v28  ;;  %v495_v36 = vunpack.c.h.b16 %v81_v28  ;;  %v5164_v46 = vld [vmem:[#allocation5 + $0x130] sm:$0xff]  ;;  %v5163_v50 = vld [vmem:[#allocation5 + $0x128] sm:$0xff]  ;;  %v5162_v54 = vld [vmem:[#allocation5 + $0x120] sm:$0xff] }
  0x22   :  { %1732 = vmatpush.bf16.msra.mxu1 %v5138_v13  ;;  %v5172_v47 = vld [vmem:[#allocation5 + $0x170] sm:$0xff]  ;;  %v5171_v51 = vld [vmem:[#allocation5 + $0x168] sm:$0xff]  ;;  %v5170_v55 = vld [vmem:[#allocation5 + $0x160] sm:$0xff] }
  0x23   :  { %1745 = vmatpush.bf16.msra.mxu2 %v5146_v14  ;;  %v518_v42 = vpack.c.b16 %v494_v32, %v494_v32  ;;  %v519_v44 = vpack.c.b16 %v495_v36, %v495_v36  ;;  %v5180_v48 = vld [vmem:[#allocation5 + $0x1b0] sm:$0xff]  ;;  %v5179_v52 = vld [vmem:[#allocation5 + $0x1a8] sm:$0xff]  ;;  %v5178_v56 = vld [vmem:[#allocation5 + $0x1a0] sm:$0xff] }
  0x24   :  { %1758 = vmatpush.bf16.msra.mxu3 %v5154_v15  ;;  %v5188_v49 = vld [vmem:[#allocation5 + $0x1f0] sm:$0xff]  ;;  %v5187_v53 = vld [vmem:[#allocation5 + $0x1e8] sm:$0xff]  ;;  %v5186_v57 = vld [vmem:[#allocation5 + $0x1e0] sm:$0xff] }
  0x25   :  { %1720 = vmatpush.bf16.msra.mxu0 %v5129_v16  ;;  %v5161_v58 = vld [vmem:[#allocation5 + $0x118] sm:$0xff]  ;;  %v5160_v62 = vld [vmem:[#allocation5 + $0x110] sm:$0xff]  ;;  %v5159_v2 = vld [vmem:[#allocation5 + $0x108] sm:$0xff] }
  0x26   :  { %1733 = vmatpush.bf16.msra.mxu1 %v5137_v17  ;;  %v5169_v59 = vld [vmem:[#allocation5 + $0x158] sm:$0xff]  ;;  %v5168_v63 = vld [vmem:[#allocation5 + $0x150] sm:$0xff]  ;;  %v5167_v3 = vld [vmem:[#allocation5 + $0x148] sm:$0xff] }
  0x27   :  { %1746 = vmatpush.bf16.msra.mxu2 %v5145_v18  ;;  %v5177_v60 = vld [vmem:[#allocation5 + $0x198] sm:$0xff]  ;;  %v5176_v0 = vld [vmem:[#allocation5 + $0x190] sm:$0xff]  ;;  %v5175_v4 = vld [vmem:[#allocation5 + $0x188] sm:$0xff] }
  0x28   :  { %1759 = vmatpush.bf16.msra.mxu3 %v5153_v19  ;;  %v5185_v61 = vld [vmem:[#allocation5 + $0x1d8] sm:$0xff]  ;;  %v5184_v1 = vld [vmem:[#allocation5 + $0x1d0] sm:$0xff]  ;;  %v5183_v5 = vld [vmem:[#allocation5 + $0x1c8] sm:$0xff] }
  0x29   :  { %1721 = vmatpush.bf16.msra.mxu0 %v5128_v20  ;;  %v83_v6 = vld [vmem:[#allocation2 + $0x18] sm:$0xff]  ;;  %v82_v7 = vld [vmem:[#allocation2 + $0x10] sm:$0xff]  ;;  %v5158_v8 = vld [vmem:[#allocation5 + $0x100] sm:$0xff] }
  0x2a   :  { %1734 = vmatpush.bf16.msra.mxu1 %v5136_v21  ;;  %v5166_v9 = vld [vmem:[#allocation5 + $0x140] sm:$0xff]  ;;  %v498_v10 = vunpack.c.l.b16 %v83_v6  ;;  %v496_v11 = vunpack.c.l.b16 %v82_v7  ;;  %v499_v14 = vunpack.c.h.b16 %v83_v6  ;;  %v497_v15 = vunpack.c.h.b16 %v82_v7  ;;  %v5197_v16 = vld [vmem:[#allocation5 + $0x238] sm:$0xff]  ;;  %v5195_v28 = vld [vmem:[#allocation5 + $0x228] sm:$0xff] }
  0x2b   :  { %1747 = vmatpush.bf16.msra.mxu2 %v5144_v22  ;;  %v5174_v12 = vld [vmem:[#allocation5 + $0x180] sm:$0xff]  ;;  %v5205_v17 = vld [vmem:[#allocation5 + $0x278] sm:$0xff]  ;;  %v5203_v29 = vld [vmem:[#allocation5 + $0x268] sm:$0xff] }
  0x2c   :  { %1760 = vmatpush.bf16.msra.mxu3 %v5152_v23  ;;  %v5182_v13 = vld [vmem:[#allocation5 + $0x1c0] sm:$0xff]  ;;  %v5213_v18 = vld [vmem:[#allocation5 + $0x2b8] sm:$0xff]  ;;  %v522_v20 = vpack.c.b16 %v498_v10, %v498_v10  ;;  %v520_v21 = vpack.c.b16 %v496_v11, %v496_v11  ;;  %v523_v22 = vpack.c.b16 %v499_v14, %v499_v14  ;;  %v521_v23 = vpack.c.b16 %v497_v15, %v497_v15  ;;  %v5227_v6 = vld [vmem:[#allocation5 + $0x328] sm:$0xff] }
  0x2d   :  { %1722 = vmatpush.bf16.msra.mxu0 %v5127_v24  ;;  %v5221_v19 = vld [vmem:[#allocation5 + $0x2f8] sm:$0xff]  ;;  %v5196_v24 = vld [vmem:[#allocation5 + $0x230] sm:$0xff]  ;;  %v5194_v32 = vld [vmem:[#allocation5 + $0x220] sm:$0xff] }
  0x2e   :  { %1735 = vmatpush.bf16.msra.mxu1 %v5135_v25  ;;  %v5204_v25 = vld [vmem:[#allocation5 + $0x270] sm:$0xff]  ;;  %v5202_v33 = vld [vmem:[#allocation5 + $0x260] sm:$0xff]  ;;  %v5193_v36 = vld [vmem:[#allocation5 + $0x218] sm:$0xff] }
  0x2f   :  { %1748 = vmatpush.bf16.msra.mxu2 %v5143_v26  ;;  %v5212_v26 = vld [vmem:[#allocation5 + $0x2b0] sm:$0xff]  ;;  %v5201_v37 = vld [vmem:[#allocation5 + $0x258] sm:$0xff]  ;;  %v5235_v7 = vld [vmem:[#allocation5 + $0x368] sm:$0xff] }
  0x30   :  { %1761 = vmatpush.bf16.msra.mxu3 %v5151_v27  ;;  %v5220_v27 = vld [vmem:[#allocation5 + $0x2f0] sm:$0xff]  ;;  %v5226_v10 = vld [vmem:[#allocation5 + $0x320] sm:$0xff]  ;;  %v5225_v14 = vld [vmem:[#allocation5 + $0x318] sm:$0xff] }
  0x31   :  { %1723 = vmatpush.bf16.msra.mxu0 %v5126_v30  ;;  %v5211_v30 = vld [vmem:[#allocation5 + $0x2a8] sm:$0xff]  ;;  %v5234_v11 = vld [vmem:[#allocation5 + $0x360] sm:$0xff]  ;;  %v5233_v15 = vld [vmem:[#allocation5 + $0x358] sm:$0xff] }
  0x32   :  { %1736 = vmatpush.bf16.msra.mxu1 %v5134_v31  ;;  %v5219_v31 = vld [vmem:[#allocation5 + $0x2e8] sm:$0xff] }
  0x33   :  { %1749 = vmatpush.bf16.msra.mxu2 %v5142_v34  ;;  %v5210_v34 = vld [vmem:[#allocation5 + $0x2a0] sm:$0xff] }
  0x34   :  { %1762 = vmatpush.bf16.msra.mxu3 %v5150_v35  ;;  %1724 = vmatmul.bf16.vlgmr.msra.gmra.mxu0 %v516_v43  ;;  %v5218_v35 = vld [vmem:[#allocation5 + $0x2e0] sm:$0xff]  ;;  %v5216_v43 = vld [vmem:[#allocation5 + $0x2d0] sm:$0xff] }
  0x35   :  { %1768 = vmatpush.bf16.msrb.mxu0 %v5165_v38  ;;  %1737 = vmatmul.bf16.vlgmr.msra.gmra.mxu1 %v517_v45  ;;  %v5209_v38 = vld [vmem:[#allocation5 + $0x298] sm:$0xff]  ;;  %v5199_v45 = vld [vmem:[#allocation5 + $0x248] sm:$0xff] }
  0x36   :  { %1781 = vmatpush.bf16.msrb.mxu1 %v5173_v39  ;;  %1750 = vmatmul.bf16.vlgmr.msra.gmra.mxu2 %v518_v42  ;;  %v5217_v39 = vld [vmem:[#allocation5 + $0x2d8] sm:$0xff]  ;;  %v5208_v42 = vld [vmem:[#allocation5 + $0x290] sm:$0xff] }
  0x37   :  { %1794 = vmatpush.bf16.msrb.mxu2 %v5181_v40  ;;  %1763 = vmatmul.bf16.vlgmr.msra.gmra.mxu3 %v519_v44  ;;  %v5192_v40 = vld [vmem:[#allocation5 + $0x210] sm:$0xff]  ;;  %v5191_v44 = vld [vmem:[#allocation5 + $0x208] sm:$0xff] }
  0x38   :  { %1807 = vmatpush.bf16.msrb.mxu3 %v5189_v41  ;;  %v5200_v41 = vld [vmem:[#allocation5 + $0x250] sm:$0xff] }
  0x39   :  { %1769 = vmatpush.bf16.msrb.mxu0 %v5164_v46  ;;  %v5207_v46 = vld [vmem:[#allocation5 + $0x288] sm:$0xff] }
  0x3a   :  { %1782 = vmatpush.bf16.msrb.mxu1 %v5172_v47  ;;  %v5215_v47 = vld [vmem:[#allocation5 + $0x2c8] sm:$0xff] }
  0x3b   :  { %1795 = vmatpush.bf16.msrb.mxu2 %v5180_v48  ;;  %v84_v48 = vld [vmem:[#allocation2 + $0x20] sm:$0xff] }
  0x3c   :  { %1808 = vmatpush.bf16.msrb.mxu3 %v5188_v49  ;;  %v85_v49 = vld [vmem:[#allocation2 + $0x28] sm:$0xff] }
  0x3d   :  { %1770 = vmatpush.bf16.msrb.mxu0 %v5163_v50  ;;  %v5190_v50 = vld [vmem:[#allocation5 + $0x200] sm:$0xff] }
  0x3e   :  { %1783 = vmatpush.bf16.msrb.mxu1 %v5171_v51  ;;  %v5198_v51 = vld [vmem:[#allocation5 + $0x240] sm:$0xff] }
  0x3f   :  { %1796 = vmatpush.bf16.msrb.mxu2 %v5179_v52  ;;  %v500_v52 = vunpack.c.l.b16 %v84_v48 }
  0x40   :  { %1809 = vmatpush.bf16.msrb.mxu3 %v5187_v53  ;;  %v502_v53 = vunpack.c.l.b16 %v85_v49 }
  0x41   :  { %1771 = vmatpush.bf16.msrb.mxu0 %v5162_v54  ;;  %v5206_v54 = vld [vmem:[#allocation5 + $0x280] sm:$0xff] }
  0x42   :  { %1784 = vmatpush.bf16.msrb.mxu1 %v5170_v55  ;;  %v5214_v55 = vld [vmem:[#allocation5 + $0x2c0] sm:$0xff] }
  0x43   :  { %1797 = vmatpush.bf16.msrb.mxu2 %v5178_v56  ;;  %v501_v56 = vunpack.c.h.b16 %v84_v48  ;;  %v5259_v48 = vld [vmem:[#allocation5 + $0x428] sm:$0xff] }
  0x44   :  { %1810 = vmatpush.bf16.msrb.mxu3 %v5186_v57  ;;  %v503_v57 = vunpack.c.h.b16 %v85_v49  ;;  %v5267_v49 = vld [vmem:[#allocation5 + $0x468] sm:$0xff] }
  0x45   :  { %1772 = vmatpush.bf16.msrb.mxu0 %v5161_v58  ;;  %v5229_v58 = vld [vmem:[#allocation5 + $0x338] sm:$0xff] }
  0x46   :  { %1785 = vmatpush.bf16.msrb.mxu1 %v5169_v59  ;;  %v5237_v59 = vld [vmem:[#allocation5 + $0x378] sm:$0xff] }
  0x47   :  { %1798 = vmatpush.bf16.msrb.mxu2 %v5177_v60  ;;  %v5245_v60 = vld [vmem:[#allocation5 + $0x3b8] sm:$0xff] }
  0x48   :  { %1811 = vmatpush.bf16.msrb.mxu3 %v5185_v61  ;;  %v5253_v61 = vld [vmem:[#allocation5 + $0x3f8] sm:$0xff] }
  0x49   :  { %1773 = vmatpush.bf16.msrb.mxu0 %v5160_v62  ;;  %v524_v62 = vpack.c.b16 %v500_v52, %v500_v52  ;;  %v5258_v52 = vld [vmem:[#allocation5 + $0x420] sm:$0xff] }
  0x4a   :  { %1786 = vmatpush.bf16.msrb.mxu1 %v5168_v63  ;;  %v526_v63 = vpack.c.b16 %v502_v53, %v502_v53  ;;  %v5266_v53 = vld [vmem:[#allocation5 + $0x460] sm:$0xff] }
  0x4b   :  { %1799 = vmatpush.bf16.msrb.mxu2 %v5176_v0  ;;  %v525_v0 = vpack.c.b16 %v501_v56, %v501_v56  ;;  %v5257_v56 = vld [vmem:[#allocation5 + $0x418] sm:$0xff] }
  0x4c   :  { %1812 = vmatpush.bf16.msrb.mxu3 %v5184_v1  ;;  %v527_v1 = vpack.c.b16 %v503_v57, %v503_v57  ;;  %v5265_v57 = vld [vmem:[#allocation5 + $0x458] sm:$0xff] }
  0x4d   :  { %1774 = vmatpush.bf16.msrb.mxu0 %v5159_v2  ;;  %v5228_v2 = vld [vmem:[#allocation5 + $0x330] sm:$0xff] }
  0x4e   :  { %1787 = vmatpush.bf16.msrb.mxu1 %v5167_v3  ;;  %v5236_v3 = vld [vmem:[#allocation5 + $0x370] sm:$0xff] }
  0x4f   :  { %1800 = vmatpush.bf16.msrb.mxu2 %v5175_v4  ;;  %v5244_v4 = vld [vmem:[#allocation5 + $0x3b0] sm:$0xff] }
  0x50   :  { %1813 = vmatpush.bf16.msrb.mxu3 %v5183_v5  ;;  %v5252_v5 = vld [vmem:[#allocation5 + $0x3f0] sm:$0xff] }
  0x51   :  { %1775 = vmatpush.bf16.msrb.mxu0 %v5158_v8  ;;  %v5243_v8 = vld [vmem:[#allocation5 + $0x3a8] sm:$0xff] }
  0x52   :  { %1788 = vmatpush.bf16.msrb.mxu1 %v5166_v9  ;;  %v5251_v9 = vld [vmem:[#allocation5 + $0x3e8] sm:$0xff] }
  0x53   :  { %1801 = vmatpush.bf16.msrb.mxu2 %v5174_v12  ;;  %v5242_v12 = vld [vmem:[#allocation5 + $0x3a0] sm:$0xff] }
  0x54   :  { %1814 = vmatpush.bf16.msrb.mxu3 %v5182_v13  ;;  %1776 = vmatmul.bf16.vlgmr.msrb.gmra.mxu0 %v520_v21  ;;  %v5250_v13 = vld [vmem:[#allocation5 + $0x3e0] sm:$0xff]  ;;  %v5248_v21 = vld [vmem:[#allocation5 + $0x3d0] sm:$0xff] }
  0x55   :  { %1820 = vmatpush.bf16.msra.mxu0 %v5197_v16  ;;  %1789 = vmatmul.bf16.vlgmr.msrb.gmra.mxu1 %v521_v23  ;;  %v5241_v16 = vld [vmem:[#allocation5 + $0x398] sm:$0xff]  ;;  %v5231_v23 = vld [vmem:[#allocation5 + $0x348] sm:$0xff] }
  0x56   :  { %1833 = vmatpush.bf16.msra.mxu1 %v5205_v17  ;;  %1802 = vmatmul.bf16.vlgmr.msrb.gmra.mxu2 %v522_v20  ;;  %v5249_v17 = vld [vmem:[#allocation5 + $0x3d8] sm:$0xff]  ;;  %v5240_v20 = vld [vmem:[#allocation5 + $0x390] sm:$0xff] }
  0x57   :  { %1846 = vmatpush.bf16.msra.mxu2 %v5213_v18  ;;  %1815 = vmatmul.bf16.vlgmr.msrb.gmra.mxu3 %v523_v22  ;;  %v5224_v18 = vld [vmem:[#allocation5 + $0x310] sm:$0xff]  ;;  %v5223_v22 = vld [vmem:[#allocation5 + $0x308] sm:$0xff] }
  0x58   :  { %1859 = vmatpush.bf16.msra.mxu3 %v5221_v19  ;;  %v5232_v19 = vld [vmem:[#allocation5 + $0x350] sm:$0xff] }
  0x59   :  { %1821 = vmatpush.bf16.msra.mxu0 %v5196_v24  ;;  %v5239_v24 = vld [vmem:[#allocation5 + $0x388] sm:$0xff] }
  0x5a   :  { %1834 = vmatpush.bf16.msra.mxu1 %v5204_v25  ;;  %v5247_v25 = vld [vmem:[#allocation5 + $0x3c8] sm:$0xff] }
  0x5b   :  { %1847 = vmatpush.bf16.msra.mxu2 %v5212_v26  ;;  %v86_v26 = vld [vmem:[#allocation2 + $0x30] sm:$0xff] }
  0x5c   :  { %1860 = vmatpush.bf16.msra.mxu3 %v5220_v27  ;;  %v87_v27 = vld [vmem:[#allocation2 + $0x38] sm:$0xff] }
  0x5d   :  { %1822 = vmatpush.bf16.msra.mxu0 %v5195_v28  ;;  %v5222_v28 = vld [vmem:[#allocation5 + $0x300] sm:$0xff] }
  0x5e   :  { %1835 = vmatpush.bf16.msra.mxu1 %v5203_v29  ;;  %v5230_v29 = vld [vmem:[#allocation5 + $0x340] sm:$0xff] }
  0x5f   :  { %1848 = vmatpush.bf16.msra.mxu2 %v5211_v30  ;;  %v504_v30 = vunpack.c.l.b16 %v86_v26 }
  0x60   :  { %1861 = vmatpush.bf16.msra.mxu3 %v5219_v31  ;;  %v506_v31 = vunpack.c.l.b16 %v87_v27 }
  0x61   :  { %1823 = vmatpush.bf16.msra.mxu0 %v5194_v32  ;;  %v5238_v32 = vld [vmem:[#allocation5 + $0x380] sm:$0xff] }
  0x62   :  { %1836 = vmatpush.bf16.msra.mxu1 %v5202_v33  ;;  %v5246_v33 = vld [vmem:[#allocation5 + $0x3c0] sm:$0xff] }
  0x63   :  { %1849 = vmatpush.bf16.msra.mxu2 %v5210_v34  ;;  %v505_v34 = vunpack.c.h.b16 %v86_v26  ;;  %v5291_v26 = vld [vmem:[#allocation5 + $0x528] sm:$0xff] }
  0x64   :  { %1862 = vmatpush.bf16.msra.mxu3 %v5218_v35  ;;  %v507_v35 = vunpack.c.h.b16 %v87_v27  ;;  %v5299_v27 = vld [vmem:[#allocation5 + $0x568] sm:$0xff] }
  0x65   :  { %1824 = vmatpush.bf16.msra.mxu0 %v5193_v36  ;;  %v5261_v36 = vld [vmem:[#allocation5 + $0x438] sm:$0xff] }
  0x66   :  { %1837 = vmatpush.bf16.msra.mxu1 %v5201_v37  ;;  %v5269_v37 = vld [vmem:[#allocation5 + $0x478] sm:$0xff] }
  0x67   :  { %1850 = vmatpush.bf16.msra.mxu2 %v5209_v38  ;;  %v5277_v38 = vld [vmem:[#allocation5 + $0x4b8] sm:$0xff] }
  0x68   :  { %1863 = vmatpush.bf16.msra.mxu3 %v5217_v39  ;;  %v5285_v39 = vld [vmem:[#allocation5 + $0x4f8] sm:$0xff] }
  0x69   :  { %1825 = vmatpush.bf16.msra.mxu0 %v5192_v40  ;;  %v528_v40 = vpack.c.b16 %v504_v30, %v504_v30  ;;  %v5315_v30 = vld [vmem:[#allocation5 + $0x5e8] sm:$0xff] }
  0x6a   :  { %1838 = vmatpush.bf16.msra.mxu1 %v5200_v41  ;;  %v530_v41 = vpack.c.b16 %v506_v31, %v506_v31 }
  0x6b   :  { %1851 = vmatpush.bf16.msra.mxu2 %v5208_v42  ;;  %v529_v42 = vpack.c.b16 %v505_v34, %v505_v34 }
  0x6c   :  { %1864 = vmatpush.bf16.msra.mxu3 %v5216_v43  ;;  %v531_v43 = vpack.c.b16 %v507_v35, %v507_v35 }
  0x6d   :  { %1826 = vmatpush.bf16.msra.mxu0 %v5191_v44  ;;  %v5260_v44 = vld [vmem:[#allocation5 + $0x430] sm:$0xff] }
  0x6e   :  { %1839 = vmatpush.bf16.msra.mxu1 %v5199_v45  ;;  %v5268_v45 = vld [vmem:[#allocation5 + $0x470] sm:$0xff] }
  0x6f   :  { %1852 = vmatpush.bf16.msra.mxu2 %v5207_v46  ;;  %v5276_v46 = vld [vmem:[#allocation5 + $0x4b0] sm:$0xff] }
  0x70   :  { %1865 = vmatpush.bf16.msra.mxu3 %v5215_v47  ;;  %v5284_v47 = vld [vmem:[#allocation5 + $0x4f0] sm:$0xff] }
  0x71   :  { %1827 = vmatpush.bf16.msra.mxu0 %v5190_v50  ;;  %v5275_v50 = vld [vmem:[#allocation5 + $0x4a8] sm:$0xff] }
  0x72   :  { %1840 = vmatpush.bf16.msra.mxu1 %v5198_v51  ;;  %v5283_v51 = vld [vmem:[#allocation5 + $0x4e8] sm:$0xff] }
  0x73   :  { %1853 = vmatpush.bf16.msra.mxu2 %v5206_v54  ;;  %v5274_v54 = vld [vmem:[#allocation5 + $0x4a0] sm:$0xff] }
  0x74   :  { %1866 = vmatpush.bf16.msra.mxu3 %v5214_v55  ;;  %1828 = vmatmul.bf16.vlgmr.msra.gmra.mxu0 %v524_v62  ;;  %v5282_v55 = vld [vmem:[#allocation5 + $0x4e0] sm:$0xff]  ;;  %v5272_v62 = vld [vmem:[#allocation5 + $0x490] sm:$0xff] }
  0x75   :  { %1872 = vmatpush.bf16.msrb.mxu0 %v5229_v58  ;;  %1841 = vmatmul.bf16.vlgmr.msra.gmra.mxu1 %v525_v0  ;;  %v5273_v58 = vld [vmem:[#allocation5 + $0x498] sm:$0xff]  ;;  %v5255_v0 = vld [vmem:[#allocation5 + $0x408] sm:$0xff] }
  0x76   :  { %1885 = vmatpush.bf16.msrb.mxu1 %v5237_v59  ;;  %1854 = vmatmul.bf16.vlgmr.msra.gmra.mxu2 %v526_v63  ;;  %v5281_v59 = vld [vmem:[#allocation5 + $0x4d8] sm:$0xff]  ;;  %v5280_v63 = vld [vmem:[#allocation5 + $0x4d0] sm:$0xff] }
  0x77   :  { %1898 = vmatpush.bf16.msrb.mxu2 %v5245_v60  ;;  %1867 = vmatmul.bf16.vlgmr.msra.gmra.mxu3 %v527_v1  ;;  %v5256_v60 = vld [vmem:[#allocation5 + $0x410] sm:$0xff]  ;;  %v5263_v1 = vld [vmem:[#allocation5 + $0x448] sm:$0xff] }
  0x78   :  { %1911 = vmatpush.bf16.msrb.mxu3 %v5253_v61  ;;  %v5264_v61 = vld [vmem:[#allocation5 + $0x450] sm:$0xff] }
  0x79   :  { %1873 = vmatpush.bf16.msrb.mxu0 %v5228_v2  ;;  %v5271_v2 = vld [vmem:[#allocation5 + $0x488] sm:$0xff] }
  0x7a   :  { %1886 = vmatpush.bf16.msrb.mxu1 %v5236_v3  ;;  %v5279_v3 = vld [vmem:[#allocation5 + $0x4c8] sm:$0xff] }
  0x7b   :  { %1899 = vmatpush.bf16.msrb.mxu2 %v5244_v4  ;;  %v88_v4 = vld [vmem:[#allocation2 + $0x40] sm:$0xff] }
  0x7c   :  { %1912 = vmatpush.bf16.msrb.mxu3 %v5252_v5  ;;  %v89_v5 = vld [vmem:[#allocation2 + $0x48] sm:$0xff] }
  0x7d   :  { %1874 = vmatpush.bf16.msrb.mxu0 %v5227_v6  ;;  %v5254_v6 = vld [vmem:[#allocation5 + $0x400] sm:$0xff] }
  0x7e   :  { %1887 = vmatpush.bf16.msrb.mxu1 %v5235_v7  ;;  %v5262_v7 = vld [vmem:[#allocation5 + $0x440] sm:$0xff] }
  0x7f   :  { %1900 = vmatpush.bf16.msrb.mxu2 %v5243_v8  ;;  %v508_v8 = vunpack.c.l.b16 %v88_v4 }
  0x80   :  { %1913 = vmatpush.bf16.msrb.mxu3 %v5251_v9  ;;  %v510_v9 = vunpack.c.l.b16 %v89_v5 }
  0x81   :  { %1875 = vmatpush.bf16.msrb.mxu0 %v5226_v10  ;;  %v5270_v10 = vld [vmem:[#allocation5 + $0x480] sm:$0xff] }
  0x82   :  { %1888 = vmatpush.bf16.msrb.mxu1 %v5234_v11  ;;  %v5278_v11 = vld [vmem:[#allocation5 + $0x4c0] sm:$0xff] }
  0x83   :  { %1901 = vmatpush.bf16.msrb.mxu2 %v5242_v12  ;;  %v509_v12 = vunpack.c.h.b16 %v88_v4  ;;  %v5310_v4 = vld [vmem:[#allocation5 + $0x5c0] sm:$0xff] }
  0x84   :  { %1914 = vmatpush.bf16.msrb.mxu3 %v5250_v13  ;;  %v511_v13 = vunpack.c.h.b16 %v89_v5 }
  0x85   :  { %1876 = vmatpush.bf16.msrb.mxu0 %v5225_v14  ;;  %v5293_v14 = vld [vmem:[#allocation5 + $0x538] sm:$0xff] }
  0x86   :  { %1889 = vmatpush.bf16.msrb.mxu1 %v5233_v15  ;;  %v5301_v15 = vld [vmem:[#allocation5 + $0x578] sm:$0xff] }
  0x87   :  { %1902 = vmatpush.bf16.msrb.mxu2 %v5241_v16  ;;  %v5309_v16 = vld [vmem:[#allocation5 + $0x5b8] sm:$0xff] }
  0x88   :  { %1915 = vmatpush.bf16.msrb.mxu3 %v5249_v17  ;;  %v5317_v17 = vld [vmem:[#allocation5 + $0x5f8] sm:$0xff] }
  0x89   :  { %1877 = vmatpush.bf16.msrb.mxu0 %v5224_v18  ;;  %v532_v18 = vpack.c.b16 %v508_v8, %v508_v8 }
  0x8a   :  { %1890 = vmatpush.bf16.msrb.mxu1 %v5232_v19  ;;  %v534_v19 = vpack.c.b16 %v510_v9, %v510_v9 }
  0x8b   :  { %1903 = vmatpush.bf16.msrb.mxu2 %v5240_v20  ;;  %v533_v20 = vpack.c.b16 %v509_v12, %v509_v12 }
  0x8c   :  { %1916 = vmatpush.bf16.msrb.mxu3 %v5248_v21  ;;  %v535_v21 = vpack.c.b16 %v511_v13, %v511_v13 }
  0x8d   :  { %1878 = vmatpush.bf16.msrb.mxu0 %v5223_v22  ;;  %v5292_v22 = vld [vmem:[#allocation5 + $0x530] sm:$0xff] }
  0x8e   :  { %1891 = vmatpush.bf16.msrb.mxu1 %v5231_v23  ;;  %v5300_v23 = vld [vmem:[#allocation5 + $0x570] sm:$0xff] }
  0x8f   :  { %1904 = vmatpush.bf16.msrb.mxu2 %v5239_v24  ;;  %v5308_v24 = vld [vmem:[#allocation5 + $0x5b0] sm:$0xff] }
  0x90   :  { %1917 = vmatpush.bf16.msrb.mxu3 %v5247_v25  ;;  %v5316_v25 = vld [vmem:[#allocation5 + $0x5f0] sm:$0xff] }
  0x91   :  { %1879 = vmatpush.bf16.msrb.mxu0 %v5222_v28  ;;  %v5519_v28 = vld [vmem:[%s5748_s2] ss:$0 sm:$0xff]  ;;  %s5656_s2 = smov [#allocation10]  }
  0x92   :  { %1892 = vmatpush.bf16.msrb.mxu1 %v5230_v29  ;;  %v5307_v29 = vld [vmem:[#allocation5 + $0x5a8] sm:$0xff]  ;;  %s3576_s15 = sshll.u32 %s5656_s2, 4  ;;  %s3577_s15 = int_to_ptr.vmem [resolvable:$true] %s3576_s15 }
  0x93   :  { %1905 = vmatpush.bf16.msrb.mxu2 %v5238_v32  ;;  %v5290_v32 = vld [vmem:[#allocation5 + $0x520] sm:$0xff] }
  0x94   :  { %1918 = vmatpush.bf16.msrb.mxu3 %v5246_v33  ;;  %1880 = vmatmul.bf16.vlgmr.msrb.gmra.mxu0 %v528_v40  ;;  %v5298_v33 = vld [vmem:[#allocation5 + $0x560] sm:$0xff]  ;;  %v5297_v40 = vld [vmem:[#allocation5 + $0x558] sm:$0xff] }
  0x95   :  { %1924 = vmatpush.bf16.msra.mxu0 %v5261_v36  ;;  %1893 = vmatmul.bf16.vlgmr.msrb.gmra.mxu1 %v529_v42  ;;  %v5306_v36 = vld [vmem:[#allocation5 + $0x5a0] sm:$0xff]  ;;  %v5313_v42 = vld [vmem:[#allocation5 + $0x5d8] sm:$0xff] }
  0x96   :  { %1937 = vmatpush.bf16.msra.mxu1 %v5269_v37  ;;  %1906 = vmatmul.bf16.vlgmr.msrb.gmra.mxu2 %v530_v41  ;;  %v5314_v37 = vld [vmem:[#allocation5 + $0x5e0] sm:$0xff]  ;;  %v5305_v41 = vld [vmem:[#allocation5 + $0x598] sm:$0xff] }
  0x97   :  { %1950 = vmatpush.bf16.msra.mxu2 %v5277_v38  ;;  %1919 = vmatmul.bf16.vlgmr.msrb.gmra.mxu3 %v531_v43 }
  0x98   :  { %1963 = vmatpush.bf16.msra.mxu3 %v5285_v39  ;;  %v5289_v39 = vld [vmem:[#allocation5 + $0x518] sm:$0xff] }
  0x99   :  { %1925 = vmatpush.bf16.msra.mxu0 %v5260_v44 }
  0x9a   :  { %1938 = vmatpush.bf16.msra.mxu1 %v5268_v45 }
  0x9b   :  { %1951 = vmatpush.bf16.msra.mxu2 %v5276_v46 }
  0x9c   :  { %1964 = vmatpush.bf16.msra.mxu3 %v5284_v47  ;;  %v5288_v47 = vld [vmem:[#allocation5 + $0x510] sm:$0xff] }
  0x9d   :  { %1926 = vmatpush.bf16.msra.mxu0 %v5259_v48  ;;  %v5296_v48 = vld [vmem:[#allocation5 + $0x550] sm:$0xff] }
  0x9e   :  { %1939 = vmatpush.bf16.msra.mxu1 %v5267_v49 }
  0x9f   :  { %1952 = vmatpush.bf16.msra.mxu2 %v5275_v50 }
  0xa0   :  { %1965 = vmatpush.bf16.msra.mxu3 %v5283_v51  ;;  %v5304_v51 = vld [vmem:[#allocation5 + $0x590] sm:$0xff] }
  0xa1   :  { %1927 = vmatpush.bf16.msra.mxu0 %v5258_v52  ;;  %v5312_v52 = vld [vmem:[#allocation5 + $0x5d0] sm:$0xff] }
  0xa2   :  { %1940 = vmatpush.bf16.msra.mxu1 %v5266_v53  ;;  %v5287_v53 = vld [vmem:[#allocation5 + $0x508] sm:$0xff] }
  0xa3   :  { %1953 = vmatpush.bf16.msra.mxu2 %v5274_v54  ;;  %v5295_v54 = vld [vmem:[#allocation5 + $0x548] sm:$0xff] }
  0xa4   :  { %1966 = vmatpush.bf16.msra.mxu3 %v5282_v55  ;;  %v90_v55 = vld [vmem:[#allocation2 + $0x50] sm:$0xff] }
  0xa5   :  { %1928 = vmatpush.bf16.msra.mxu0 %v5257_v56  ;;  %v5303_v56 = vld [vmem:[#allocation5 + $0x588] sm:$0xff] }
  0xa6   :  { %1941 = vmatpush.bf16.msra.mxu1 %v5265_v57  ;;  %v5311_v57 = vld [vmem:[#allocation5 + $0x5c8] sm:$0xff] }
  0xa7   :  { %1954 = vmatpush.bf16.msra.mxu2 %v5273_v58  ;;  %v91_v58 = vld [vmem:[#allocation2 + $0x58] sm:$0xff] }
  0xa8   :  { %1967 = vmatpush.bf16.msra.mxu3 %v5281_v59 }
  0xa9   :  { %1929 = vmatpush.bf16.msra.mxu0 %v5256_v60 }
  0xaa   :  { %1942 = vmatpush.bf16.msra.mxu1 %v5264_v61  ;;  %v512_v61 = vunpack.c.l.b16 %v90_v55 }
  0xab   :  { %1955 = vmatpush.bf16.msra.mxu2 %v5272_v62  ;;  %v513_v62 = vunpack.c.h.b16 %v90_v55  ;;  %v5450_v55 = vld [vmem:[#allocation7 + $0x41c] sm:$0xf0] }
  0xac   :  { %1968 = vmatpush.bf16.msra.mxu3 %v5280_v63  ;;  %v5286_v63 = vld [vmem:[#allocation5 + $0x500] sm:$0xff]  ;;  %v536_v5 = vpack.c.b16 %v512_v61, %v512_v61 }
  0xad   :  { %1930 = vmatpush.bf16.msra.mxu0 %v5255_v0  ;;  %v5294_v0 = vld [vmem:[#allocation5 + $0x540] sm:$0xff] }
  0xae   :  { %1943 = vmatpush.bf16.msra.mxu1 %v5263_v1  ;;  %v514_v1 = vunpack.c.l.b16 %v91_v58 }
  0xaf   :  { %1956 = vmatpush.bf16.msra.mxu2 %v5271_v2  ;;  %v515_v2 = vunpack.c.h.b16 %v91_v58  ;;  %v4842_v58 = vld [vmem:[#allocation7 + $0x420] sm:$0xf0] }
  0xb0   :  { %1969 = vmatpush.bf16.msra.mxu3 %v5279_v3  ;;  %v5302_v3 = vld [vmem:[#allocation5 + $0x580] sm:$0xff] }
  0xb1   :  { %1931 = vmatpush.bf16.msra.mxu0 %v5254_v6  ;;  %v1725_v31 = vpop.f32.mrf.mxu0  ;;  %v537_v6 = vpack.c.b16 %v513_v62, %v513_v62  ;;  %v539_v8 = vpack.c.b16 %v515_v2, %v515_v2  ;;  %v5451_v62 = vld [vmem:[#allocation7 + $0x424] sm:$0xf0] }
  0xb2   :  { %1944 = vmatpush.bf16.msra.mxu1 %v5262_v7  ;;  %v1726_v34 = vadd.f32 %v5519_v28, %v1725_v31  ;;  %v1738_v35 = vpop.f32.mrf.mxu1  ;;  %v538_v7 = vpack.c.b16 %v514_v1, %v514_v1  ;;  %v5032_v28 = vld [vmem:[#allocation7 + $0x540] sm:$0xf] }
  0xb3   :  { %1957 = vmatpush.bf16.msra.mxu2 %v5270_v10 }
  0xb4   :  { %1970 = vmatpush.bf16.msra.mxu3 %v5278_v11  ;;  %1932 = vmatmul.bf16.vlgmr.msra.gmra.mxu0 %v532_v18  ;;  %v1739_v38 = vadd.f32 %v1738_v35, %v1726_v34  ;;  %v5040_v34 = vld [vmem:[#allocation7 + $0x548] sm:$0xf] }
  0xb5   :  { %1976 = vmatpush.bf16.msrb.mxu0 %v5293_v14  ;;  %1945 = vmatmul.bf16.vlgmr.msra.gmra.mxu1 %v533_v20  ;;  %v5499_v35 = vld [vmem:[#allocation7 + $0x5a4] sm:$0xf0] }
  0xb6   :  { %1989 = vmatpush.bf16.msrb.mxu1 %v5301_v15  ;;  %1958 = vmatmul.bf16.vlgmr.msra.gmra.mxu2 %v534_v19 }
  0xb7   :  { %2002 = vmatpush.bf16.msrb.mxu2 %v5309_v16  ;;  %1971 = vmatmul.bf16.vlgmr.msra.gmra.mxu3 %v535_v21 }
  0xb8   :  { %2015 = vmatpush.bf16.msrb.mxu3 %v5317_v17 }
  0xb9   :  { %1977 = vmatpush.bf16.msrb.mxu0 %v5292_v22  ;;  %v1751_v43 = vpop.f32.mrf.mxu2  ;;  %v1727_v46 = vpop.f32.mrf.mxu0 }
  0xba   :  { %1990 = vmatpush.bf16.msrb.mxu1 %v5300_v23  ;;  %v1752_v44 = vadd.f32 %v1751_v43, %v1739_v38  ;;  %v1764_v45 = vpop.f32.mrf.mxu3  ;;  %v1740_v50 = vpop.f32.mrf.mxu1  ;;  %v4938_v46 = vld [vmem:[#allocation7 + $0x4e0] sm:$0xf0] }
  0xbb   :  { %2003 = vmatpush.bf16.msrb.mxu2 %v5308_v24  ;;  %v5475_v50 = vld [vmem:[#allocation7 + $0x4e4] sm:$0xf0] }
  0xbc   :  { %2016 = vmatpush.bf16.msrb.mxu3 %v5316_v25  ;;  %v1765_v49 = vadd.f32 %v1764_v45, %v1752_v44  ;;  %v5474_v44 = vld [vmem:[#allocation7 + $0x4dc] sm:$0xf0]  ;;  %v5462_v45 = vld [vmem:[#allocation7 + $0x484] sm:$0xf] }
  0xbd   :  { %1978 = vmatpush.bf16.msrb.mxu0 %v5291_v26 }
  0xbe   :  { %1991 = vmatpush.bf16.msrb.mxu1 %v5299_v27 }
  0xbf   :  { %2004 = vmatpush.bf16.msrb.mxu2 %v5307_v29  ;;  %v5498_v29 = vld [vmem:[#allocation7 + $0x59c] sm:$0xf0] }
  0xc0   :  { %2017 = vmatpush.bf16.msrb.mxu3 %v5315_v30  ;;  %v5486_v30 = vld [vmem:[#allocation7 + $0x544] sm:$0xf] }
  0xc1   :  { %1979 = vmatpush.bf16.msrb.mxu0 %v5290_v32  ;;  %v1753_v59 = vpop.f32.mrf.mxu2  ;;  %v5033_v32 = vor.u32 %v5498_v29, %v5032_v28 }
  0xc2   :  { %1992 = vmatpush.bf16.msrb.mxu1 %v5298_v33  ;;  %v1766_v60 = vpop.f32.mrf.mxu3  ;;  %v5034_v33 = vld [vmem:[#allocation7 + $0x5a0] sm:$0xf0]  ;;  %v4848_v59 = vld [vmem:[#allocation7 + $0x3c8] sm:$0xf] }
  0xc3   :  { %2005 = vmatpush.bf16.msrb.mxu2 %v5306_v36  ;;  %v5037_v38 = vor.u32 %v5486_v30, %v5034_v33  ;;  %v4552_v30 = vld [vmem:[#allocation7 + $0x180] sm:$0xf] }
  0xc4   :  { %2018 = vmatpush.bf16.msrb.mxu3 %v5314_v37 }
  0xc5   :  { %1980 = vmatpush.bf16.msrb.mxu0 %v5289_v39  ;;  %v5041_v39 = vor.u32 %v5499_v35, %v5040_v34  ;;  %v4554_v35 = vld [vmem:[#allocation7 + $0x1e0] sm:$0xf0] }
  0xc6   :  { %1993 = vmatpush.bf16.msrb.mxu1 %v5297_v40  ;;  %v5487_v40 = vld [vmem:[#allocation7 + $0x54c] sm:$0xf] }
  0xc7   :  { %2006 = vmatpush.bf16.msrb.mxu2 %v5305_v41  ;;  %v5042_v41 = vld [vmem:[#allocation7 + $0x5a8] sm:$0xf0] }
  0xc8   :  { %2019 = vmatpush.bf16.msrb.mxu3 %v5313_v42  ;;  %v4936_v42 = vld [vmem:[#allocation7 + $0x480] sm:$0xf]  ;;  %v5045_v43 = vor.u32 %v5487_v40, %v5042_v41  ;;  %v5367_v41 = vld [vmem:[#allocation7 + $0x18c] sm:$0xf] }
  0xc9   :  { %1981 = vmatpush.bf16.msrb.mxu0 %v5288_v47  ;;  %v4937_v47 = vor.u32 %v5474_v44, %v4936_v42  ;;  %v4562_v42 = vld [vmem:[#allocation7 + $0x1e8] sm:$0xf0]  ;;  %v4456_v44 = vld [vmem:[#allocation7 + $0xc0] sm:$0xf] }
  0xca   :  { %1994 = vmatpush.bf16.msrb.mxu1 %v5296_v48  ;;  %v4941_v48 = vor.u32 %v5462_v45, %v4938_v46  ;;  %v5354_v45 = vld [vmem:[#allocation7 + $0x11c] sm:$0xf0]  ;;  %v5342_v46 = vld [vmem:[#allocation7 + $0xc4] sm:$0xf] }
  0xcb   :  { %2007 = vmatpush.bf16.msrb.mxu2 %v5304_v51  ;;  %v5463_v51 = vld [vmem:[#allocation7 + $0x48c] sm:$0xf] }
  0xcc   :  { %2020 = vmatpush.bf16.msrb.mxu3 %v5312_v52 }
  0xcd   :  { %1982 = vmatpush.bf16.msrb.mxu0 %v5287_v53  ;;  %v4946_v53 = vld [vmem:[#allocation7 + $0x4e8] sm:$0xf0] }
  0xce   :  { %1995 = vmatpush.bf16.msrb.mxu1 %v5295_v54  ;;  %v4840_v54 = vld [vmem:[#allocation7 + $0x3c0] sm:$0xf] }
  0xcf   :  { %2008 = vmatpush.bf16.msrb.mxu2 %v5303_v56  ;;  %v4949_v56 = vor.u32 %v5463_v51, %v4946_v53  ;;  %v4841_v61 = vor.u32 %v5450_v55, %v4840_v54  ;;  %v5343_v54 = vld [vmem:[#allocation7 + $0xcc] sm:$0xf] }
  0xd0   :  { %2021 = vmatpush.bf16.msrb.mxu3 %v5311_v57  ;;  %v5438_v57 = vld [vmem:[#allocation7 + $0x3c4] sm:$0xf]  ;;  %v4466_v55 = vld [vmem:[#allocation7 + $0x128] sm:$0xf0] }
  0xd1   :  { %1983 = vmatpush.bf16.msrb.mxu0 %v5286_v63  ;;  %v1777_v9 = vpop.f32.mrf.mxu0  ;;  %v5439_v63 = vld [vmem:[#allocation7 + $0x3cc] sm:$0xf]  ;;  %v4845_v2 = vor.u32 %v5438_v57, %v4842_v58  ;;  %v4469_v57 = vor.u32 %v5343_v54, %v4466_v55  ;;  %v4360_v58 = vld [vmem:[#allocation7] sm:$0xf]  ;;  %v4768_v54 = vld [vmem:[#allocation7 + $0x318] sm:$0xf] }
  0xd2   :  { %1996 = vmatpush.bf16.msrb.mxu1 %v5294_v0  ;;  %v1778_v10 = vadd.f32 %v1777_v9, %v1765_v49  ;;  %v1790_v11 = vpop.f32.mrf.mxu1  ;;  %v4944_v49 = vld [vmem:[#allocation7 + $0x488] sm:$0xf]  ;;  %v4850_v0 = vld [vmem:[#allocation7 + $0x428] sm:$0xf0]  ;;  %v5429_v55 = vld [vmem:[#allocation7 + $0x374] sm:$0xf0] }
  0xd3   :  { %2009 = vmatpush.bf16.msrb.mxu2 %v5302_v3  ;;  %v4945_v52 = vor.u32 %v5475_v50, %v4944_v49  ;;  %v4849_v3 = vor.u32 %v5451_v62, %v4848_v59  ;;  %v4752_v9 = vld [vmem:[#allocation7 + $0x308] sm:$0xf]  ;;  %v5330_v59 = vld [vmem:[#allocation7 + $0x5c] sm:$0xf0] }
  0xd4   :  { %2022 = vmatpush.bf16.msrb.mxu3 %v5310_v4  ;;  %1984 = vmatmul.bf16.vlgmr.msrb.gmra.mxu0 %v536_v5  ;;  %v1791_v12 = vadd.f32 %v1790_v11, %v1778_v10  ;;  %v4744_v4 = vld [vmem:[#allocation7 + $0x300] sm:$0xf]  ;;  %v5427_v10 = vld [vmem:[#allocation7 + $0x364] sm:$0xf0]  ;;  %v5415_v11 = vld [vmem:[#allocation7 + $0x30c] sm:$0xf]  ;;  %v4361_v62 = vor.u32 %v5330_v59, %v4360_v58 }
  0xd5   :  { %1997 = vmatmul.bf16.vlgmr.msrb.gmra.mxu1 %v537_v6  ;;  %3235 = vmatpush.bf16.msra.mxu0 %v5033_v32  ;;  %v5426_v5 = vld [vmem:[#allocation7 + $0x35c] sm:$0xf0]  ;;  %v5414_v6 = vld [vmem:[#allocation7 + $0x304] sm:$0xf]  ;;  %v4464_v49 = vld [vmem:[#allocation7 + $0xc8] sm:$0xf] }
  0xd6   :  { %2010 = vmatmul.bf16.vlgmr.msrb.gmra.mxu2 %v538_v7  ;;  %3248 = vmatpush.bf16.msra.mxu1 %v5037_v38  ;;  %v4853_v7 = vor.u32 %v5439_v63, %v4850_v0  ;;  %v5366_v32 = vld [vmem:[#allocation7 + $0x184] sm:$0xf]  ;;  %v5379_v38 = vld [vmem:[#allocation7 + $0x1e4] sm:$0xf0]  ;;  %v4770_v58 = vld [vmem:[#allocation7 + $0x378] sm:$0xf0] }
  0xd7   :  { %2023 = vmatmul.bf16.vlgmr.msrb.gmra.mxu3 %v539_v8  ;;  %3261 = vmatpush.bf16.msra.mxu2 %v5041_v39  ;;  %v4746_v8 = vld [vmem:[#allocation7 + $0x360] sm:$0xf0]  ;;  %v4557_v39 = vor.u32 %v5366_v32, %v4554_v35  ;;  %v5355_v50 = vld [vmem:[#allocation7 + $0x124] sm:$0xf0] }
  0xd8   :  { %3274 = vmatpush.bf16.msra.mxu3 %v5045_v43  ;;  %v4565_v43 = vor.u32 %v5367_v41, %v4562_v42  ;;  %v4465_v53 = vor.u32 %v5355_v50, %v4464_v49  ;;  %v4362_v63 = vld [vmem:[#allocation7 + $0x60] sm:$0xf0]  ;;  %v4368_v0 = vld [vmem:[#allocation7 + $0x8] sm:$0xf]  ;;  %v4864_v41 = vld [vmem:[#allocation7 + $0x3d8] sm:$0xf] }
  0xd9   :  { %v1803_v13 = vpop.f32.mrf.mxu2  ;;  %v1779_v16 = vpop.f32.mrf.mxu0  ;;  %3236 = vmatpush.bf16.msra.mxu0 %v4937_v47  ;;  %v4457_v47 = vor.u32 %v5354_v45, %v4456_v44  ;;  %v5453_v42 = vld [vmem:[#allocation7 + $0x434] sm:$0xf0]  ;;  %v5441_v44 = vld [vmem:[#allocation7 + $0x3dc] sm:$0xf]  ;;  %v5428_v49 = vld [vmem:[#allocation7 + $0x36c] sm:$0xf0] }
  0xda   :  { %v1804_v14 = vadd.f32 %v1803_v13, %v1791_v12  ;;  %v1816_v15 = vpop.f32.mrf.mxu3  ;;  %v1792_v18 = vpop.f32.mrf.mxu1  ;;  %3249 = vmatpush.bf16.msra.mxu1 %v4941_v48  ;;  %v4754_v12 = vld [vmem:[#allocation7 + $0x368] sm:$0xf0]  ;;  %v4745_v13 = vor.u32 %v5426_v5, %v4744_v4  ;;  %v4458_v48 = vld [vmem:[#allocation7 + $0x120] sm:$0xf0]  ;;  %v4866_v45 = vld [vmem:[#allocation7 + $0x438] sm:$0xf0] }
  0xdb   :  { %3262 = vmatpush.bf16.msra.mxu2 %v4945_v52  ;;  %v4757_v16 = vor.u32 %v5415_v11, %v4754_v12  ;;  %v5402_v18 = vld [vmem:[#allocation7 + $0x29c] sm:$0xf0]  ;;  %v4461_v52 = vor.u32 %v5342_v46, %v4458_v48  ;;  %v5319_v5 = vld [vmem:[#allocation7 + $0xc] sm:$0xf]  ;;  %v5050_v11 = vld [vmem:[#allocation7 + $0x5b0] sm:$0xf0] }
  0xdc   :  { %v1817_v17 = vadd.f32 %v1816_v15, %v1804_v14  ;;  %3275 = vmatpush.bf16.msra.mxu3 %v4949_v56  ;;  %v4749_v14 = vor.u32 %v5414_v6, %v4746_v8  ;;  %v4753_v15 = vor.u32 %v5427_v10, %v4752_v9  ;;  %v4370_v6 = vld [vmem:[#allocation7 + $0x68] sm:$0xf0]  ;;  %v5500_v9 = vld [vmem:[#allocation7 + $0x5ac] sm:$0xf0]  ;;  %v5488_v10 = vld [vmem:[#allocation7 + $0x554] sm:$0xf] }
  0xdd   :  { %3237 = vmatpush.bf16.msra.mxu0 %v4841_v61  ;;  %v4373_v8 = vor.u32 %v5319_v5, %v4370_v6  ;;  %v4760_v48 = vld [vmem:[#allocation7 + $0x310] sm:$0xf]  ;;  %v5416_v50 = vld [vmem:[#allocation7 + $0x314] sm:$0xf]  ;;  %v5405_v5 = vld [vmem:[#allocation7 + $0x2b4] sm:$0xf0] }
  0xde   :  { %3250 = vmatpush.bf16.msra.mxu1 %v4845_v2  ;;  %v4761_v59 = vor.u32 %v5428_v49, %v4760_v48  ;;  %v4378_v48 = vld [vmem:[#allocation7 + $0x70] sm:$0xf0]  ;;  %v4384_v49 = vld [vmem:[#allocation7 + $0x18] sm:$0xf] }
  0xdf   :  { %3263 = vmatpush.bf16.msra.mxu2 %v4849_v3 }
  0xe0   :  { %3276 = vmatpush.bf16.msra.mxu3 %v4853_v7  ;;  %v5048_v7 = vld [vmem:[#allocation7 + $0x550] sm:$0xf] }
  0xe1   :  { %v1805_v19 = vpop.f32.mrf.mxu2  ;;  %3238 = vmatpush.bf16.msra.mxu0 %v4745_v13  ;;  %v5049_v12 = vor.u32 %v5500_v9, %v5048_v7  ;;  %v5053_v13 = vor.u32 %v5488_v10, %v5050_v11  ;;  %v4674_v9 = vld [vmem:[#allocation7 + $0x2b8] sm:$0xf0]  ;;  %v4568_v11 = vld [vmem:[#allocation7 + $0x190] sm:$0xf] }
  0xe2   :  { %v1818_v20 = vpop.f32.mrf.mxu3  ;;  %3251 = vmatpush.bf16.msra.mxu1 %v4749_v14  ;;  %v5390_v19 = vld [vmem:[#allocation7 + $0x244] sm:$0xf]  ;;  %v5056_v14 = vld [vmem:[#allocation7 + $0x558] sm:$0xf] }
  0xe3   :  { %3264 = vmatpush.bf16.msra.mxu2 %v4753_v15  ;;  %v5501_v15 = vld [vmem:[#allocation7 + $0x5b4] sm:$0xf0] }
  0xe4   :  { %3277 = vmatpush.bf16.msra.mxu3 %v4757_v16  ;;  %v5489_v16 = vld [vmem:[#allocation7 + $0x55c] sm:$0xf] }
  0xf1   :  { %v1829_v21 = vpop.f32.mrf.mxu0 }
  0xf2   :  { %v1830_v22 = vadd.f32 %v1829_v21, %v1817_v17  ;;  %v1842_v23 = vpop.f32.mrf.mxu1  ;;  %v4648_v17 = vld [vmem:[#allocation7 + $0x240] sm:$0xf]  ;;  %v4650_v21 = vld [vmem:[#allocation7 + $0x2a0] sm:$0xf0] }
  0xf3   :  { %v4649_v20 = vor.u32 %v5402_v18, %v4648_v17  ;;  %v5057_v17 = vor.u32 %v5501_v15, %v5056_v14  ;;  %v5058_v18 = vld [vmem:[#allocation7 + $0x5b8] sm:$0xf0] }
  0xf4   :  { %v1843_v24 = vadd.f32 %v1842_v23, %v1830_v22  ;;  %v4656_v22 = vld [vmem:[#allocation7 + $0x248] sm:$0xf] }
  0xf5   :  { %v5403_v23 = vld [vmem:[#allocation7 + $0x2a4] sm:$0xf0]  ;;  %3239 = vmatpush.bf16.msra.mxu0 %v4649_v20  ;;  %v5476_v20 = vld [vmem:[#allocation7 + $0x4ec] sm:$0xf0] }
  0xf9   :  { %v1855_v25 = vpop.f32.mrf.mxu2  ;;  %v1831_v31 = vpop.f32.mrf.mxu0 }
  0xfa   :  { %v1856_v26 = vadd.f32 %v1855_v25, %v1843_v24  ;;  %v1868_v27 = vpop.f32.mrf.mxu3  ;;  %v1844_v37 = vpop.f32.mrf.mxu1  ;;  %v4653_v24 = vor.u32 %v5390_v19, %v4650_v21  ;;  %v4657_v25 = vor.u32 %v5403_v23, %v4656_v22  ;;  %v5378_v31 = vld [vmem:[#allocation7 + $0x1dc] sm:$0xf0]  ;;  %v4952_v19 = vld [vmem:[#allocation7 + $0x490] sm:$0xf]  ;;  %v5061_v21 = vor.u32 %v5489_v16, %v5058_v18  ;;  %v5464_v23 = vld [vmem:[#allocation7 + $0x494] sm:$0xf] }
  0xfb   :  { %v4553_v34 = vor.u32 %v5378_v31, %v4552_v30  ;;  %v4560_v37 = vld [vmem:[#allocation7 + $0x188] sm:$0xf]  ;;  %v4953_v22 = vor.u32 %v5476_v20, %v4952_v19  ;;  %v5465_v30 = vld [vmem:[#allocation7 + $0x49c] sm:$0xf]  ;;  %v4570_v16 = vld [vmem:[#allocation7 + $0x1f0] sm:$0xf0] }
  0xfc   :  { %v5702_v36 = vadd.f32 %v1868_v27, %v1856_v26  ;;  %v5391_v26 = vld [vmem:[#allocation7 + $0x24c] sm:$0xf]  ;;  %3252 = vmatpush.bf16.msra.mxu1 %v4653_v24  ;;  %3265 = vmatpush.bf16.msra.mxu2 %v4657_v25  ;;  %v4561_v40 = vor.u32 %v5379_v38, %v4560_v37  ;;  %v4954_v24 = vld [vmem:[#allocation7 + $0x4f0] sm:$0xf0]  ;;  %v4960_v25 = vld [vmem:[#allocation7 + $0x498] sm:$0xf] }
  0xfd   :  { %v4658_v27 = vld [vmem:[#allocation7 + $0x2a8] sm:$0xf0]  ;;  %3240 = vmatpush.bf16.msra.mxu0 %v4553_v34  ;;  %v4962_v31 = vld [vmem:[#allocation7 + $0x4f8] sm:$0xf0]  ;;  %v4856_v37 = vld [vmem:[#allocation7 + $0x3d0] sm:$0xf] }
  0xfe   :  { %v4661_v28 = vor.u32 %v5391_v26, %v4658_v27  ;;  %v4957_v27 = vor.u32 %v5464_v23, %v4954_v24  ;;  %v4965_v35 = vor.u32 %v5465_v30, %v4962_v31  ;;  %v5452_v38 = vld [vmem:[#allocation7 + $0x42c] sm:$0xf0]  ;;  %v5381_v18 = vld [vmem:[#allocation7 + $0x1f4] sm:$0xf0]  ;;  %v4578_v23 = vld [vmem:[#allocation7 + $0x1f8] sm:$0xf0] }
  0xff   :  { %v4474_v30 = vld [vmem:[#allocation7 + $0x130] sm:$0xf0]  ;;  %v4480_v31 = vld [vmem:[#allocation7 + $0xd8] sm:$0xf] }
 0x100   :  { %3278 = vmatpush.bf16.msra.mxu3 %v4661_v28  ;;  %3253 = vmatpush.bf16.msra.mxu1 %v4557_v39  ;;  %v5477_v28 = vld [vmem:[#allocation7 + $0x4f4] sm:$0xf0]  ;;  %v5440_v39 = vld [vmem:[#allocation7 + $0x3d4] sm:$0xf] }
 0x101   :  { %v1857_v60 = vpop.f32.mrf.mxu2  ;;  %3266 = vmatpush.bf16.msra.mxu2 %v4561_v40  ;;  %3241 = vmatpush.bf16.msra.mxu0 %v4457_v47  ;;  %v4961_v34 = vor.u32 %v5477_v28, %v4960_v25  ;;  %v4858_v40 = vld [vmem:[#allocation7 + $0x430] sm:$0xf0]  ;;  %v4865_v47 = vor.u32 %v5453_v42, %v4864_v41  ;;  %v4472_v25 = vld [vmem:[#allocation7 + $0xd0] sm:$0xf] }
 0x102   :  { %v1870_v1 = vpop.f32.mrf.mxu3  ;;  %v5318_v60 = vld [vmem:[#allocation7 + $0x4] sm:$0xf]  ;;  %v4861_v46 = vor.u32 %v5440_v39, %v4858_v40 }
 0x103   :  { %v5331_v1 = vld [vmem:[#allocation7 + $0x64] sm:$0xf0]  ;;  %v4365_v3 = vor.u32 %v5318_v60, %v4362_v63  ;;  %v4664_v63 = vld [vmem:[#allocation7 + $0x250] sm:$0xf] }
 0x104   :  { %3279 = vmatpush.bf16.msra.mxu3 %v4565_v43  ;;  %3254 = vmatpush.bf16.msra.mxu1 %v4461_v52  ;;  %v4369_v4 = vor.u32 %v5331_v1, %v4368_v0  ;;  %v4857_v43 = vor.u32 %v5452_v38, %v4856_v37  ;;  %v4869_v52 = vor.u32 %v5441_v44, %v4866_v45  ;;  %v5404_v0 = vld [vmem:[#allocation7 + $0x2ac] sm:$0xf0]  ;;  %v5392_v1 = vld [vmem:[#allocation7 + $0x254] sm:$0xf]  ;;  %v5345_v37 = vld [vmem:[#allocation7 + $0xdc] sm:$0xf] }
 0x105   :  { %3267 = vmatpush.bf16.msra.mxu2 %v4465_v53  ;;  %3242 = vmatpush.bf16.msra.mxu0 %v4361_v62  ;;  %v4762_v53 = vld [vmem:[#allocation7 + $0x370] sm:$0xf0]  ;;  %v4482_v38 = vld [vmem:[#allocation7 + $0x138] sm:$0xf0]  ;;  %v5332_v44 = vld [vmem:[#allocation7 + $0x6c] sm:$0xf0] }
 0x106   :  { %v4765_v60 = vor.u32 %v5416_v50, %v4762_v53  ;;  %v4485_v40 = vor.u32 %v5345_v37, %v4482_v38  ;;  %v5320_v45 = vld [vmem:[#allocation7 + $0x14] sm:$0xf]  ;;  %v5333_v50 = vld [vmem:[#allocation7 + $0x74] sm:$0xf0]  ;;  %v4872_v37 = vld [vmem:[#allocation7 + $0x3e0] sm:$0xf] }
 0x107   :  { %v4381_v53 = vor.u32 %v5320_v45, %v4378_v48  ;;  %v5454_v38 = vld [vmem:[#allocation7 + $0x43c] sm:$0xf0]  ;;  %v5443_v45 = vld [vmem:[#allocation7 + $0x3ec] sm:$0xf] }
 0x108   :  { %3280 = vmatpush.bf16.msra.mxu3 %v4469_v57  ;;  %3255 = vmatpush.bf16.msra.mxu1 %v4365_v3  ;;  %v5417_v57 = vld [vmem:[#allocation7 + $0x31c] sm:$0xf]  ;;  %v4666_v3 = vld [vmem:[#allocation7 + $0x2b0] sm:$0xf0] }
 0x109   :  { %3268 = vmatpush.bf16.msra.mxu2 %v4369_v4  ;;  %3287 = vmatpush.bf16.msrb.mxu0 %v5049_v12  ;;  %v4773_v62 = vor.u32 %v5417_v57, %v4770_v58  ;;  %v4672_v4 = vld [vmem:[#allocation7 + $0x258] sm:$0xf]  ;;  %v4669_v6 = vor.u32 %v5392_v1, %v4666_v3  ;;  %v5380_v12 = vld [vmem:[#allocation7 + $0x1ec] sm:$0xf0]  ;;  %v4386_v57 = vld [vmem:[#allocation7 + $0x78] sm:$0xf0] }
 0x10a   :  { %v4673_v7 = vor.u32 %v5405_v5, %v4672_v4  ;;  %v4569_v15 = vor.u32 %v5380_v12, %v4568_v11  ;;  %v5490_v11 = vld [vmem:[#allocation7 + $0x564] sm:$0xf] }
 0x10b   :  { %v5066_v12 = vld [vmem:[#allocation7 + $0x5c0] sm:$0xf0] }
 0x10c   :  { %3281 = vmatpush.bf16.msra.mxu3 %v4373_v8  ;;  %3300 = vmatpush.bf16.msrb.mxu1 %v5053_v13  ;;  %v5393_v8 = vld [vmem:[#allocation7 + $0x25c] sm:$0xf]  ;;  %v5368_v13 = vld [vmem:[#allocation7 + $0x194] sm:$0xf] }
 0x10d   :  { %3313 = vmatpush.bf16.msrb.mxu2 %v5057_v17  ;;  %3288 = vmatpush.bf16.msrb.mxu0 %v4953_v22  ;;  %v4677_v10 = vor.u32 %v5393_v8, %v4674_v9  ;;  %v4576_v17 = vld [vmem:[#allocation7 + $0x198] sm:$0xf]  ;;  %v4573_v20 = vor.u32 %v5368_v13, %v4570_v16  ;;  %v5369_v22 = vld [vmem:[#allocation7 + $0x19c] sm:$0xf]  ;;  %v5072_v13 = vld [vmem:[#allocation7 + $0x568] sm:$0xf] }
 0x10e   :  { %v4581_v24 = vor.u32 %v5369_v22, %v4578_v23  ;;  %v5074_v16 = vld [vmem:[#allocation7 + $0x5c8] sm:$0xf0] }
 0x110   :  { %3326 = vmatpush.bf16.msrb.mxu3 %v5061_v21  ;;  %3301 = vmatpush.bf16.msrb.mxu1 %v4957_v27  ;;  %v4577_v21 = vor.u32 %v5381_v18, %v4576_v17  ;;  %v5344_v27 = vld [vmem:[#allocation7 + $0xd4] sm:$0xf] }
 0x111   :  { %v5704_v29 = vpop.f32.mrf.mxu0  ;;  %3314 = vmatpush.bf16.msrb.mxu2 %v4961_v34  ;;  %3289 = vmatpush.bf16.msrb.mxu0 %v4857_v43  ;;  %v4477_v34 = vor.u32 %v5344_v27, %v4474_v30  ;;  %v4376_v43 = vld [vmem:[#allocation7 + $0x10] sm:$0xf]  ;;  %v5479_v27 = vld [vmem:[#allocation7 + $0x504] sm:$0xf0]  ;;  %v4978_v30 = vld [vmem:[#allocation7 + $0x508] sm:$0xf0] }
 0x112   :  { %v5706_v33 = vpop.f32.mrf.mxu1  ;;  %v1882_v41 = vadd.f32 %v5704_v29, %v5702_v36 }
 0x114   :  { %3327 = vmatpush.bf16.msrb.mxu3 %v4965_v35  ;;  %3302 = vmatpush.bf16.msrb.mxu1 %v4861_v46  ;;  %v1895_v36 = vadd.f32 %v5706_v33, %v1882_v41  ;;  %v5442_v41 = vld [vmem:[#allocation7 + $0x3e4] sm:$0xf] }
 0x115   :  { %3315 = vmatpush.bf16.msrb.mxu2 %v4865_v47  ;;  %3290 = vmatpush.bf16.msrb.mxu0 %v4761_v59  ;;  %v4377_v47 = vor.u32 %v5332_v44, %v4376_v43  ;;  %v4880_v43 = vld [vmem:[#allocation7 + $0x3e8] sm:$0xf] }
 0x116   :  { %v5455_v44 = vld [vmem:[#allocation7 + $0x444] sm:$0xf0] }
 0x118   :  { %3328 = vmatpush.bf16.msrb.mxu3 %v4869_v52  ;;  %3303 = vmatpush.bf16.msrb.mxu1 %v4765_v60 }
 0x119   :  { %v5708_v51 = vpop.f32.mrf.mxu2  ;;  %v1883_v61 = vpop.f32.mrf.mxu0 }
 0x11a   :  { %v5710_v56 = vpop.f32.mrf.mxu3  ;;  %v1896_v2 = vpop.f32.mrf.mxu1  ;;  %v4769_v61 = vor.u32 %v5429_v55, %v4768_v54  ;;  %v4385_v54 = vor.u32 %v5333_v50, %v4384_v49  ;;  %v5321_v55 = vld [vmem:[#allocation7 + $0x1c] sm:$0xf]  ;;  %v1908_v29 = vadd.f32 %v5708_v51, %v1895_v36  ;;  %v5502_v51 = vld [vmem:[#allocation7 + $0x5bc] sm:$0xf0]  ;;  %v5419_v36 = vld [vmem:[#allocation7 + $0x32c] sm:$0xf] }
 0x11b   :  { %v4665_v2 = vor.u32 %v5404_v0, %v4664_v63  ;;  %v4389_v58 = vor.u32 %v5321_v55, %v4386_v57  ;;  %v4776_v49 = vld [vmem:[#allocation7 + $0x320] sm:$0xf]  ;;  %v4778_v55 = vld [vmem:[#allocation7 + $0x380] sm:$0xf0]  ;;  %v4784_v57 = vld [vmem:[#allocation7 + $0x328] sm:$0xf] }
 0x11c   :  { %3316 = vmatpush.bf16.msrb.mxu2 %v4769_v61  ;;  %3329 = vmatpush.bf16.msrb.mxu3 %v4773_v62  ;;  %v1921_v61 = vadd.f32 %v5710_v56, %v1908_v29  ;;  %v5503_v56 = vld [vmem:[#allocation7 + $0x5c4] sm:$0xf0]  ;;  %v5430_v50 = vld [vmem:[#allocation7 + $0x37c] sm:$0xf0]  ;;  %v4786_v29 = vld [vmem:[#allocation7 + $0x388] sm:$0xf0] }
 0x11d   :  { %3291 = vmatpush.bf16.msrb.mxu0 %v4665_v2  ;;  %3304 = vmatpush.bf16.msrb.mxu1 %v4669_v6  ;;  %v5073_v22 = vor.u32 %v5503_v56, %v5072_v13  ;;  %v4592_v13 = vld [vmem:[#allocation7 + $0x1a8] sm:$0xf]  ;;  %v5371_v56 = vld [vmem:[#allocation7 + $0x1ac] sm:$0xf] }
 0x120   :  { %3317 = vmatpush.bf16.msrb.mxu2 %v4673_v7  ;;  %3330 = vmatpush.bf16.msrb.mxu3 %v4677_v10  ;;  %v5064_v10 = vld [vmem:[#allocation7 + $0x560] sm:$0xf] }
 0x121   :  { %v1909_v26 = vpop.f32.mrf.mxu2  ;;  %3292 = vmatpush.bf16.msrb.mxu0 %v4569_v15  ;;  %3305 = vmatpush.bf16.msrb.mxu1 %v4573_v20  ;;  %v5065_v18 = vor.u32 %v5502_v51, %v5064_v10  ;;  %v4968_v20 = vld [vmem:[#allocation7 + $0x4a0] sm:$0xf] }
 0x122   :  { %v1922_v32 = vpop.f32.mrf.mxu3  ;;  %v5356_v26 = vld [vmem:[#allocation7 + $0x12c] sm:$0xf0] }
 0x123   :  { %v4473_v28 = vor.u32 %v5356_v26, %v4472_v25  ;;  %v5357_v32 = vld [vmem:[#allocation7 + $0x134] sm:$0xf0]  ;;  %v4970_v25 = vld [vmem:[#allocation7 + $0x500] sm:$0xf0]  ;;  %v4976_v26 = vld [vmem:[#allocation7 + $0x4a8] sm:$0xf] }
 0x124   :  { %3318 = vmatpush.bf16.msrb.mxu2 %v4577_v21  ;;  %3331 = vmatpush.bf16.msrb.mxu3 %v4581_v24  ;;  %v4481_v35 = vor.u32 %v5357_v32, %v4480_v31  ;;  %v5478_v21 = vld [vmem:[#allocation7 + $0x4fc] sm:$0xf0]  ;;  %v5466_v24 = vld [vmem:[#allocation7 + $0x4a4] sm:$0xf] }
 0x125   :  { %3293 = vmatpush.bf16.msrb.mxu0 %v4473_v28  ;;  %3306 = vmatpush.bf16.msrb.mxu1 %v4477_v34  ;;  %v5467_v28 = vld [vmem:[#allocation7 + $0x4ac] sm:$0xf]  ;;  %v4969_v34 = vor.u32 %v5478_v21, %v4968_v20  ;;  %v5358_v20 = vld [vmem:[#allocation7 + $0x13c] sm:$0xf0] }
 0x128   :  { %3319 = vmatpush.bf16.msrb.mxu2 %v4481_v35  ;;  %3332 = vmatpush.bf16.msrb.mxu3 %v4485_v40  ;;  %v4973_v35 = vor.u32 %v5466_v24, %v4970_v25  ;;  %v4981_v40 = vor.u32 %v5467_v28, %v4978_v30  ;;  %v4490_v24 = vld [vmem:[#allocation7 + $0x140] sm:$0xf0]  ;;  %v4496_v25 = vld [vmem:[#allocation7 + $0xe8] sm:$0xf]  ;;  %v4498_v28 = vld [vmem:[#allocation7 + $0x148] sm:$0xf0] }
 0x129   :  { %3294 = vmatpush.bf16.msrb.mxu0 %v4377_v47  ;;  %3307 = vmatpush.bf16.msrb.mxu1 %v4381_v53  ;;  %v4873_v47 = vor.u32 %v5454_v38, %v4872_v37  ;;  %v4392_v30 = vld [vmem:[#allocation7 + $0x20] sm:$0xf]  ;;  %v4394_v37 = vld [vmem:[#allocation7 + $0x80] sm:$0xf0] }
 0x12c   :  { %3320 = vmatpush.bf16.msrb.mxu2 %v4385_v54  ;;  %3333 = vmatpush.bf16.msrb.mxu3 %v4389_v58  ;;  %v5418_v54 = vld [vmem:[#allocation7 + $0x324] sm:$0xf]  ;;  %v5431_v58 = vld [vmem:[#allocation7 + $0x384] sm:$0xf0] }
 0x131   :  { %v1933_v14 = vpop.f32.mrf.mxu0 }
 0x132   :  { %v1946_v19 = vpop.f32.mrf.mxu1  ;;  %v1934_v62 = vadd.f32 %v1933_v14, %v1921_v61  ;;  %v5491_v14 = vld [vmem:[#allocation7 + $0x56c] sm:$0xf]  ;;  %v4680_v61 = vld [vmem:[#allocation7 + $0x260] sm:$0xf] }
 0x133   :  { %v5077_v23 = vor.u32 %v5491_v14, %v5074_v16  ;;  %v4594_v14 = vld [vmem:[#allocation7 + $0x208] sm:$0xf0] }
 0x134   :  { %v1947_v63 = vadd.f32 %v1946_v19, %v1934_v62  ;;  %v5069_v19 = vor.u32 %v5490_v11, %v5066_v12  ;;  %v5406_v62 = vld [vmem:[#allocation7 + $0x2bc] sm:$0xf0]  ;;  %v5370_v11 = vld [vmem:[#allocation7 + $0x1a4] sm:$0xf] }
 0x135   :  { %v4586_v12 = vld [vmem:[#allocation7 + $0x200] sm:$0xf0] }
 0x139   :  { %v1959_v39 = vpop.f32.mrf.mxu2  ;;  %v1935_v46 = vpop.f32.mrf.mxu0 }
 0x13a   :  { %v1972_v42 = vpop.f32.mrf.mxu3  ;;  %v1948_v52 = vpop.f32.mrf.mxu1  ;;  %v1960_v0 = vadd.f32 %v1959_v39, %v1947_v63  ;;  %v4977_v39 = vor.u32 %v5479_v27, %v4976_v26  ;;  %v4882_v46 = vld [vmem:[#allocation7 + $0x448] sm:$0xf0]  ;;  %v4785_v63 = vor.u32 %v5431_v58, %v4784_v57  ;;  %v5359_v26 = vld [vmem:[#allocation7 + $0x144] sm:$0xf0] }
 0x13b   :  { %v4881_v52 = vor.u32 %v5455_v44, %v4880_v43  ;;  %v4885_v53 = vor.u32 %v5443_v45, %v4882_v46  ;;  %v5347_v27 = vld [vmem:[#allocation7 + $0xec] sm:$0xf]  ;;  %v4497_v38 = vor.u32 %v5359_v26, %v4496_v25  ;;  %v5080_v44 = vld [vmem:[#allocation7 + $0x570] sm:$0xf]  ;;  %v5492_v46 = vld [vmem:[#allocation7 + $0x574] sm:$0xf] }
 0x13c   :  { %v1973_v1 = vadd.f32 %v1972_v42, %v1960_v0  ;;  %v4874_v42 = vld [vmem:[#allocation7 + $0x440] sm:$0xf0]  ;;  %v4789_v0 = vor.u32 %v5419_v36, %v4786_v29  ;;  %v4402_v43 = vld [vmem:[#allocation7 + $0x88] sm:$0xf0]  ;;  %v5504_v45 = vld [vmem:[#allocation7 + $0x5cc] sm:$0xf0] }
 0x13d   :  { %v4877_v48 = vor.u32 %v5442_v41, %v4874_v42  ;;  %v5335_v41 = vld [vmem:[#allocation7 + $0x84] sm:$0xf0]  ;;  %v5323_v42 = vld [vmem:[#allocation7 + $0x2c] sm:$0xf]  ;;  %v5081_v58 = vor.u32 %v5504_v45, %v5080_v44  ;;  %v4984_v29 = vld [vmem:[#allocation7 + $0x4b0] sm:$0xf] }
 0x13e   :  { %v4405_v57 = vor.u32 %v5323_v42, %v4402_v43  ;;  %v4802_v25 = vld [vmem:[#allocation7 + $0x398] sm:$0xf0]  ;;  %v4600_v43 = vld [vmem:[#allocation7 + $0x1b0] sm:$0xf] }
 0x13f   :  { %v5384_v44 = vld [vmem:[#allocation7 + $0x20c] sm:$0xf0] }
 0x141   :  { %v1961_v59 = vpop.f32.mrf.mxu2 }
 0x142   :  { %v1974_v60 = vpop.f32.mrf.mxu3  ;;  %v4777_v59 = vor.u32 %v5430_v50, %v4776_v49 }
 0x143   :  { %v4781_v60 = vor.u32 %v5418_v54, %v4778_v55  ;;  %v5090_v54 = vld [vmem:[#allocation7 + $0x5d8] sm:$0xf0] }
 0x151   :  { %v1985_v2 = vpop.f32.mrf.mxu0 }
 0x152   :  { %v1998_v3 = vpop.f32.mrf.mxu1  ;;  %v1986_v4 = vadd.f32 %v1985_v2, %v1973_v1  ;;  %v5394_v1 = vld [vmem:[#allocation7 + $0x264] sm:$0xf] }
 0x153   :  { %v4682_v2 = vld [vmem:[#allocation7 + $0x2c0] sm:$0xf0] }
 0x154   :  { %v1999_v5 = vadd.f32 %v1998_v3, %v1986_v4  ;;  %v4688_v3 = vld [vmem:[#allocation7 + $0x268] sm:$0xf] }
 0x155   :  { %v5407_v4 = vld [vmem:[#allocation7 + $0x2c4] sm:$0xf0] }
 0x156   :  { %v4689_v10 = vor.u32 %v5407_v4, %v4688_v3  ;;  %v4994_v3 = vld [vmem:[#allocation7 + $0x518] sm:$0xf0] }
 0x159   :  { %v2011_v6 = vpop.f32.mrf.mxu2  ;;  %v1987_v8 = vpop.f32.mrf.mxu0 }
 0x15a   :  { %v2024_v33 = vpop.f32.mrf.mxu3  ;;  %v2012_v7 = vadd.f32 %v2011_v6, %v1999_v5  ;;  %v2000_v9 = vpop.f32.mrf.mxu1  ;;  %v5395_v5 = vld [vmem:[#allocation7 + $0x26c] sm:$0xf]  ;;  %v4584_v8 = vld [vmem:[#allocation7 + $0x1a0] sm:$0xf] }
 0x15b   :  { %v4690_v6 = vld [vmem:[#allocation7 + $0x2c8] sm:$0xf0]  ;;  %v5382_v9 = vld [vmem:[#allocation7 + $0x1fc] sm:$0xf0] }
 0x15c   :  { %v2025_v15 = vadd.f32 %v2024_v33, %v2012_v7  ;;  %v4681_v33 = vor.u32 %v5406_v62, %v4680_v61  ;;  %v4685_v7 = vor.u32 %v5394_v1, %v4682_v2  ;;  %v4693_v51 = vor.u32 %v5395_v5, %v4690_v6  ;;  %v5468_v62 = vld [vmem:[#allocation7 + $0x4b4] sm:$0xf]  ;;  %v5481_v1 = vld [vmem:[#allocation7 + $0x514] sm:$0xf0]  ;;  %v5469_v2 = vld [vmem:[#allocation7 + $0x4bc] sm:$0xf] }
 0x15d   :  { %v4585_v16 = vor.u32 %v5382_v9, %v4584_v8  ;;  %v4888_v6 = vld [vmem:[#allocation7 + $0x3f0] sm:$0xf]  ;;  %v4997_v8 = vor.u32 %v5469_v2, %v4994_v3  ;;  %v5444_v9 = vld [vmem:[#allocation7 + $0x3f4] sm:$0xf] }
 0x15e   :  { %v5717_v17 = vpack.c.bf16 %v2025_v15, %v2025_v15  ;;  %v5383_v15 = vld [vmem:[#allocation7 + $0x204] sm:$0xf0] }
 0x15f   :  { %v4593_v21 = vor.u32 %v5383_v15, %v4592_v13  ;;  %v4898_v13 = vld [vmem:[#allocation7 + $0x458] sm:$0xf0] }
 0x160   :  { %3243 = vmatmul.bf16.vlgmr.msra.gmra.mxu0 %v5717_v17  ;;  %3256 = vmatmul.bf16.vlgmr.msra.gmra.mxu1 %v5717_v17 }
 0x161   :  { %3269 = vmatmul.bf16.vlgmr.msra.gmra.mxu2 %v5717_v17  ;;  %3282 = vmatmul.bf16.vlgmr.msra.gmra.mxu3 %v5717_v17  ;;  %v2013_v31 = vpop.f32.mrf.mxu2 }
 0x162   :  { %v2026_v32 = vpop.f32.mrf.mxu3  ;;  %3339 = vmatpush.bf16.msra.mxu0 %v5065_v18  ;;  %3352 = vmatpush.bf16.msra.mxu1 %v5069_v19  ;;  %v4589_v18 = vor.u32 %v5370_v11, %v4586_v12  ;;  %v4488_v19 = vld [vmem:[#allocation7 + $0xe0] sm:$0xf]  ;;  %v5457_v11 = vld [vmem:[#allocation7 + $0x454] sm:$0xf0]  ;;  %v5445_v12 = vld [vmem:[#allocation7 + $0x3fc] sm:$0xf] }
 0x163   :  { %3365 = vmatpush.bf16.msra.mxu2 %v5073_v22  ;;  %3378 = vmatpush.bf16.msra.mxu3 %v5077_v23  ;;  %v4597_v22 = vor.u32 %v5371_v56, %v4594_v14  ;;  %v5346_v23 = vld [vmem:[#allocation7 + $0xe4] sm:$0xf]  ;;  %v4489_v31 = vor.u32 %v5358_v20, %v4488_v19  ;;  %v4792_v14 = vld [vmem:[#allocation7 + $0x330] sm:$0xf]  ;;  %v4901_v19 = vor.u32 %v5445_v12, %v4898_v13  ;;  %v5420_v20 = vld [vmem:[#allocation7 + $0x334] sm:$0xf] }
 0x164   :  { %v4493_v32 = vor.u32 %v5346_v23, %v4490_v24  ;;  %v5433_v23 = vld [vmem:[#allocation7 + $0x394] sm:$0xf0]  ;;  %v5421_v24 = vld [vmem:[#allocation7 + $0x33c] sm:$0xf]  ;;  %v5506_v12 = vld [vmem:[#allocation7 + $0x5dc] sm:$0xf0] }
 0x165   :  { %v5494_v13 = vld [vmem:[#allocation7 + $0x584] sm:$0xf] }
 0x166   :  { %3340 = vmatpush.bf16.msra.mxu0 %v4969_v34  ;;  %3353 = vmatpush.bf16.msra.mxu1 %v4973_v35  ;;  %v5334_v34 = vld [vmem:[#allocation7 + $0x7c] sm:$0xf0]  ;;  %v5322_v35 = vld [vmem:[#allocation7 + $0x24] sm:$0xf] }
 0x167   :  { %3366 = vmatpush.bf16.msra.mxu2 %v4977_v39  ;;  %3379 = vmatpush.bf16.msra.mxu3 %v4981_v40  ;;  %v4501_v39 = vor.u32 %v5347_v27, %v4498_v28  ;;  %v4400_v40 = vld [vmem:[#allocation7 + $0x28] sm:$0xf]  ;;  %v4393_v49 = vor.u32 %v5334_v34, %v4392_v30  ;;  %v4397_v50 = vor.u32 %v5322_v35, %v4394_v37  ;;  %v4696_v28 = vld [vmem:[#allocation7 + $0x270] sm:$0xf]  ;;  %v5396_v34 = vld [vmem:[#allocation7 + $0x274] sm:$0xf] }
 0x168   :  { %v4401_v55 = vor.u32 %v5335_v41, %v4400_v40  ;;  %v5408_v30 = vld [vmem:[#allocation7 + $0x2cc] sm:$0xf0]  ;;  %v4698_v35 = vld [vmem:[#allocation7 + $0x2d0] sm:$0xf0]  ;;  %v4704_v37 = vld [vmem:[#allocation7 + $0x278] sm:$0xf] }
 0x169   :  { %v4706_v40 = vld [vmem:[#allocation7 + $0x2d8] sm:$0xf0]  ;;  %v4697_v41 = vor.u32 %v5408_v30, %v4696_v28  ;;  %v4701_v42 = vor.u32 %v5396_v34, %v4698_v35  ;;  %v5470_v30 = vld [vmem:[#allocation7 + $0x4c4] sm:$0xf]  ;;  %v5483_v34 = vld [vmem:[#allocation7 + $0x524] sm:$0xf0] }
 0x16a   :  { %3341 = vmatpush.bf16.msra.mxu0 %v4873_v47  ;;  %3354 = vmatpush.bf16.msra.mxu1 %v4877_v48  ;;  %v5082_v47 = vld [vmem:[#allocation7 + $0x5d0] sm:$0xf0]  ;;  %v5088_v48 = vld [vmem:[#allocation7 + $0x578] sm:$0xf]  ;;  %v5471_v35 = vld [vmem:[#allocation7 + $0x4cc] sm:$0xf] }
 0x16b   :  { %3367 = vmatpush.bf16.msra.mxu2 %v4881_v52  ;;  %3380 = vmatpush.bf16.msra.mxu3 %v4885_v53  ;;  %v5505_v52 = vld [vmem:[#allocation7 + $0x5d4] sm:$0xf0]  ;;  %v5493_v53 = vld [vmem:[#allocation7 + $0x57c] sm:$0xf]  ;;  %v5085_v36 = vor.u32 %v5492_v46, %v5082_v47  ;;  %v5372_v47 = vld [vmem:[#allocation7 + $0x1b4] sm:$0xf] }
 0x16c   :  { %v5093_v61 = vor.u32 %v5493_v53, %v5090_v54  ;;  %v4610_v53 = vld [vmem:[#allocation7 + $0x218] sm:$0xf0]  ;;  %v4601_v54 = vor.u32 %v5384_v44, %v4600_v43  ;;  %v5446_v44 = vld [vmem:[#allocation7 + $0x404] sm:$0xf] }
 0x16e   :  { %3342 = vmatpush.bf16.msra.mxu0 %v4777_v59  ;;  %3355 = vmatpush.bf16.msra.mxu1 %v4781_v60  ;;  %v5480_v59 = vld [vmem:[#allocation7 + $0x50c] sm:$0xf0]  ;;  %v5089_v60 = vor.u32 %v5505_v52, %v5088_v48  ;;  %v4602_v48 = vld [vmem:[#allocation7 + $0x210] sm:$0xf0]  ;;  %v5373_v52 = vld [vmem:[#allocation7 + $0x1bc] sm:$0xf] }
 0x16f   :  { %3368 = vmatpush.bf16.msra.mxu2 %v4785_v63  ;;  %3381 = vmatpush.bf16.msra.mxu3 %v4789_v0  ;;  %v4986_v63 = vld [vmem:[#allocation7 + $0x510] sm:$0xf0]  ;;  %v4992_v0 = vld [vmem:[#allocation7 + $0x4b8] sm:$0xf]  ;;  %v4985_v4 = vor.u32 %v5480_v59, %v4984_v29  ;;  %v4613_v29 = vor.u32 %v5373_v52, %v4610_v53  ;;  %v4808_v53 = vld [vmem:[#allocation7 + $0x340] sm:$0xf] }
 0x170   :  { %3295 = vmatmul.bf16.vlgmr.msrb.gmra.mxu0 %v5717_v17  ;;  %3308 = vmatmul.bf16.vlgmr.msrb.gmra.mxu1 %v5717_v17  ;;  %v4989_v5 = vor.u32 %v5468_v62, %v4986_v63  ;;  %v5348_v59 = vld [vmem:[#allocation7 + $0xf4] sm:$0xf]  ;;  %v5361_v62 = vld [vmem:[#allocation7 + $0x154] sm:$0xf0]  ;;  %v5349_v63 = vld [vmem:[#allocation7 + $0xfc] sm:$0xf] }
 0x171   :  { %3321 = vmatmul.bf16.vlgmr.msrb.gmra.mxu2 %v5717_v17  ;;  %3334 = vmatmul.bf16.vlgmr.msrb.gmra.mxu3 %v5717_v17 }
 0x172   :  { %3343 = vmatpush.bf16.msra.mxu0 %v4681_v33  ;;  %3356 = vmatpush.bf16.msra.mxu1 %v4685_v7  ;;  %v5456_v33 = vld [vmem:[#allocation7 + $0x44c] sm:$0xf0]  ;;  %v4993_v7 = vor.u32 %v5481_v1, %v4992_v0  ;;  %v4514_v0 = vld [vmem:[#allocation7 + $0x158] sm:$0xf0] }
 0x173   :  { %3369 = vmatpush.bf16.msra.mxu2 %v4689_v10  ;;  %3382 = vmatpush.bf16.msra.mxu3 %v4693_v51  ;;  %v4890_v10 = vld [vmem:[#allocation7 + $0x450] sm:$0xf0]  ;;  %v4896_v51 = vld [vmem:[#allocation7 + $0x3f8] sm:$0xf]  ;;  %v4889_v15 = vor.u32 %v5456_v33, %v4888_v6  ;;  %v4408_v1 = vld [vmem:[#allocation7 + $0x30] sm:$0xf] }
 0x174   :  { %v4893_v56 = vor.u32 %v5444_v9, %v4890_v10  ;;  %v4410_v6 = vld [vmem:[#allocation7 + $0x90] sm:$0xf0]  ;;  %v5337_v9 = vld [vmem:[#allocation7 + $0x94] sm:$0xf0]  ;;  %v5325_v10 = vld [vmem:[#allocation7 + $0x3c] sm:$0xf] }
 0x176   :  { %3344 = vmatpush.bf16.msra.mxu0 %v4585_v16  ;;  %3357 = vmatpush.bf16.msra.mxu1 %v4589_v18  ;;  %v5432_v16 = vld [vmem:[#allocation7 + $0x38c] sm:$0xf0]  ;;  %v4897_v18 = vor.u32 %v5457_v11, %v4896_v51  ;;  %v4418_v51 = vld [vmem:[#allocation7 + $0x98] sm:$0xf0]  ;;  %v5096_v11 = vld [vmem:[#allocation7 + $0x580] sm:$0xf] }
 0x177   :  { %3370 = vmatpush.bf16.msra.mxu2 %v4593_v21  ;;  %3383 = vmatpush.bf16.msra.mxu3 %v4597_v22  ;;  %v4794_v21 = vld [vmem:[#allocation7 + $0x390] sm:$0xf0]  ;;  %v4800_v22 = vld [vmem:[#allocation7 + $0x338] sm:$0xf]  ;;  %v4793_v26 = vor.u32 %v5432_v16, %v4792_v14 }
 0x178   :  { %v4797_v27 = vor.u32 %v5420_v20, %v4794_v21  ;;  %v5106_v20 = vld [vmem:[#allocation7 + $0x5e8] sm:$0xf0] }
 0x17a   :  { %3345 = vmatpush.bf16.msra.mxu0 %v4489_v31  ;;  %3358 = vmatpush.bf16.msra.mxu1 %v4493_v32  ;;  %v4801_v31 = vor.u32 %v5433_v23, %v4800_v22  ;;  %v4805_v32 = vor.u32 %v5421_v24, %v4802_v25  ;;  %v4421_v22 = vor.u32 %v5325_v10, %v4418_v51  ;;  %v5000_v25 = vld [vmem:[#allocation7 + $0x4c0] sm:$0xf] }
 0x17b   :  { %3371 = vmatpush.bf16.msra.mxu2 %v4497_v38  ;;  %3384 = vmatpush.bf16.msra.mxu3 %v4501_v39  ;;  %v5409_v38 = vld [vmem:[#allocation7 + $0x2d4] sm:$0xf0]  ;;  %v5397_v39 = vld [vmem:[#allocation7 + $0x27c] sm:$0xf]  ;;  %v5097_v23 = vor.u32 %v5506_v12, %v5096_v11  ;;  %v4616_v51 = vld [vmem:[#allocation7 + $0x1c0] sm:$0xf] }
 0x17c   :  { %v4705_v45 = vor.u32 %v5409_v38, %v4704_v37  ;;  %v4709_v46 = vor.u32 %v5397_v39, %v4706_v40  ;;  %v5010_v37 = vld [vmem:[#allocation7 + $0x528] sm:$0xf0]  ;;  %v4904_v40 = vld [vmem:[#allocation7 + $0x400] sm:$0xf] }
 0x17d   :  { %v5013_v43 = vor.u32 %v5471_v35, %v5010_v37  ;;  %v5386_v11 = vld [vmem:[#allocation7 + $0x21c] sm:$0xf0] }
 0x17e   :  { %3346 = vmatpush.bf16.msra.mxu0 %v4393_v49  ;;  %3359 = vmatpush.bf16.msra.mxu1 %v4397_v50  ;;  %v4608_v49 = vld [vmem:[#allocation7 + $0x1b8] sm:$0xf] }
 0x17f   :  { %3372 = vmatpush.bf16.msra.mxu2 %v4401_v55  ;;  %3385 = vmatpush.bf16.msra.mxu3 %v4405_v57  ;;  %v5385_v50 = vld [vmem:[#allocation7 + $0x214] sm:$0xf0]  ;;  %v4605_v55 = vor.u32 %v5372_v47, %v4602_v48  ;;  %v4504_v57 = vld [vmem:[#allocation7 + $0xf0] sm:$0xf]  ;;  %v5459_v47 = vld [vmem:[#allocation7 + $0x464] sm:$0xf0] }
 0x180   :  { %v5447_v48 = vld [vmem:[#allocation7 + $0x40c] sm:$0xf] }
 0x181   :  { %3347 = vmatmul.bf16.vlgmr.msra.gmra.mxu0 %v5717_v17  ;;  %3360 = vmatmul.bf16.vlgmr.msra.gmra.mxu1 %v5717_v17 }
 0x182   :  { %3391 = vmatpush.bf16.msrb.mxu0 %v5081_v58  ;;  %3404 = vmatpush.bf16.msrb.mxu1 %v5085_v36  ;;  %v5360_v58 = vld [vmem:[#allocation7 + $0x14c] sm:$0xf0]  ;;  %v4609_v36 = vor.u32 %v5385_v50, %v4608_v49  ;;  %v4914_v49 = vld [vmem:[#allocation7 + $0x468] sm:$0xf0] }
 0x183   :  { %3417 = vmatpush.bf16.msrb.mxu2 %v5089_v60  ;;  %3430 = vmatpush.bf16.msrb.mxu3 %v5093_v61  ;;  %v4506_v60 = vld [vmem:[#allocation7 + $0x150] sm:$0xf0]  ;;  %v4512_v61 = vld [vmem:[#allocation7 + $0xf8] sm:$0xf]  ;;  %v4505_v2 = vor.u32 %v5360_v58, %v4504_v57  ;;  %v4917_v57 = vor.u32 %v5447_v48, %v4914_v49  ;;  %v5422_v58 = vld [vmem:[#allocation7 + $0x344] sm:$0xf] }
 0x184   :  { %3373 = vmatmul.bf16.vlgmr.msra.gmra.mxu2 %v5717_v17  ;;  %3386 = vmatmul.bf16.vlgmr.msra.gmra.mxu3 %v5717_v17  ;;  %v4509_v3 = vor.u32 %v5348_v59, %v4506_v60  ;;  %v4513_v33 = vor.u32 %v5361_v62, %v4512_v61  ;;  %v5435_v59 = vld [vmem:[#allocation7 + $0x3a4] sm:$0xf0]  ;;  %v5423_v60 = vld [vmem:[#allocation7 + $0x34c] sm:$0xf]  ;;  %v5508_v48 = vld [vmem:[#allocation7 + $0x5ec] sm:$0xf0] }
 0x185   :  { %v4818_v61 = vld [vmem:[#allocation7 + $0x3a8] sm:$0xf0]  ;;  %v5496_v49 = vld [vmem:[#allocation7 + $0x594] sm:$0xf] }
 0x186   :  { %3392 = vmatpush.bf16.msrb.mxu0 %v4985_v4  ;;  %3405 = vmatpush.bf16.msrb.mxu1 %v4989_v5  ;;  %v5336_v4 = vld [vmem:[#allocation7 + $0x8c] sm:$0xf0]  ;;  %v5324_v5 = vld [vmem:[#allocation7 + $0x34] sm:$0xf] }
 0x187   :  { %3418 = vmatpush.bf16.msrb.mxu2 %v4993_v7  ;;  %3431 = vmatpush.bf16.msrb.mxu3 %v4997_v8  ;;  %v4517_v7 = vor.u32 %v5349_v63, %v4514_v0  ;;  %v4416_v8 = vld [vmem:[#allocation7 + $0x38] sm:$0xf]  ;;  %v4409_v14 = vor.u32 %v5336_v4, %v4408_v1  ;;  %v4413_v16 = vor.u32 %v5324_v5, %v4410_v6  ;;  %v4712_v0 = vld [vmem:[#allocation7 + $0x280] sm:$0xf]  ;;  %v5398_v4 = vld [vmem:[#allocation7 + $0x284] sm:$0xf] }
 0x188   :  { %v4417_v21 = vor.u32 %v5337_v9, %v4416_v8  ;;  %v5410_v1 = vld [vmem:[#allocation7 + $0x2dc] sm:$0xf0]  ;;  %v4714_v5 = vld [vmem:[#allocation7 + $0x2e0] sm:$0xf0]  ;;  %v4720_v6 = vld [vmem:[#allocation7 + $0x288] sm:$0xf] }
 0x189   :  { %v4722_v8 = vld [vmem:[#allocation7 + $0x2e8] sm:$0xf0]  ;;  %v4713_v9 = vor.u32 %v5410_v1, %v4712_v0  ;;  %v4717_v10 = vor.u32 %v5398_v4, %v4714_v5  ;;  %v5472_v1 = vld [vmem:[#allocation7 + $0x4d4] sm:$0xf]  ;;  %v5485_v4 = vld [vmem:[#allocation7 + $0x534] sm:$0xf0] }
 0x18a   :  { %3393 = vmatpush.bf16.msrb.mxu0 %v4889_v15  ;;  %3406 = vmatpush.bf16.msrb.mxu1 %v4893_v56  ;;  %v5098_v15 = vld [vmem:[#allocation7 + $0x5e0] sm:$0xf0]  ;;  %v5104_v56 = vld [vmem:[#allocation7 + $0x588] sm:$0xf]  ;;  %v5473_v5 = vld [vmem:[#allocation7 + $0x4dc] sm:$0xf] }
 0x18b   :  { %3419 = vmatpush.bf16.msrb.mxu2 %v4897_v18  ;;  %3432 = vmatpush.bf16.msrb.mxu3 %v4901_v19  ;;  %v5507_v18 = vld [vmem:[#allocation7 + $0x5e4] sm:$0xf0]  ;;  %v5495_v19 = vld [vmem:[#allocation7 + $0x58c] sm:$0xf]  ;;  %v5101_v24 = vor.u32 %v5494_v13, %v5098_v15  ;;  %v5374_v15 = vld [vmem:[#allocation7 + $0x1c4] sm:$0xf] }
 0x18c   :  { %v5109_v28 = vor.u32 %v5495_v19, %v5106_v20  ;;  %v4626_v19 = vld [vmem:[#allocation7 + $0x228] sm:$0xf0]  ;;  %v4617_v20 = vor.u32 %v5386_v11, %v4616_v51  ;;  %v5448_v11 = vld [vmem:[#allocation7 + $0x414] sm:$0xf] }
 0x18e   :  { %3394 = vmatpush.bf16.msrb.mxu0 %v4793_v26  ;;  %3407 = vmatpush.bf16.msrb.mxu1 %v4797_v27  ;;  %v5482_v26 = vld [vmem:[#allocation7 + $0x51c] sm:$0xf0]  ;;  %v5105_v27 = vor.u32 %v5507_v18, %v5104_v56  ;;  %v4618_v56 = vld [vmem:[#allocation7 + $0x220] sm:$0xf0]  ;;  %v5375_v18 = vld [vmem:[#allocation7 + $0x1cc] sm:$0xf] }
 0x18f   :  { %3420 = vmatpush.bf16.msrb.mxu2 %v4801_v31  ;;  %3433 = vmatpush.bf16.msrb.mxu3 %v4805_v32  ;;  %v5002_v31 = vld [vmem:[#allocation7 + $0x520] sm:$0xf0]  ;;  %v5008_v32 = vld [vmem:[#allocation7 + $0x4c8] sm:$0xf]  ;;  %v5001_v38 = vor.u32 %v5482_v26, %v5000_v25  ;;  %v4629_v25 = vor.u32 %v5375_v18, %v4626_v19  ;;  %v4824_v19 = vld [vmem:[#allocation7 + $0x350] sm:$0xf] }
 0x190   :  { %v5005_v39 = vor.u32 %v5470_v30, %v5002_v31  ;;  %v5350_v26 = vld [vmem:[#allocation7 + $0x104] sm:$0xf]  ;;  %v5363_v30 = vld [vmem:[#allocation7 + $0x164] sm:$0xf0]  ;;  %v5351_v31 = vld [vmem:[#allocation7 + $0x10c] sm:$0xf] }
 0x192   :  { %3395 = vmatpush.bf16.msrb.mxu0 %v4697_v41  ;;  %3408 = vmatpush.bf16.msrb.mxu1 %v4701_v42  ;;  %v5458_v41 = vld [vmem:[#allocation7 + $0x45c] sm:$0xf0]  ;;  %v5009_v42 = vor.u32 %v5483_v34, %v5008_v32  ;;  %v4530_v32 = vld [vmem:[#allocation7 + $0x168] sm:$0xf0] }
 0x193   :  { %3421 = vmatpush.bf16.msrb.mxu2 %v4705_v45  ;;  %3434 = vmatpush.bf16.msrb.mxu3 %v4709_v46  ;;  %v4906_v45 = vld [vmem:[#allocation7 + $0x460] sm:$0xf0]  ;;  %v4912_v46 = vld [vmem:[#allocation7 + $0x408] sm:$0xf]  ;;  %v4905_v50 = vor.u32 %v5458_v41, %v4904_v40  ;;  %v4424_v34 = vld [vmem:[#allocation7 + $0x40] sm:$0xf] }
 0x194   :  { %v4909_v52 = vor.u32 %v5446_v44, %v4906_v45  ;;  %v4426_v40 = vld [vmem:[#allocation7 + $0xa0] sm:$0xf0]  ;;  %v5339_v44 = vld [vmem:[#allocation7 + $0xa4] sm:$0xf0]  ;;  %v5327_v45 = vld [vmem:[#allocation7 + $0x4c] sm:$0xf] }
 0x196   :  { %3396 = vmatpush.bf16.msrb.mxu0 %v4601_v54  ;;  %3409 = vmatpush.bf16.msrb.mxu1 %v4605_v55  ;;  %v5434_v54 = vld [vmem:[#allocation7 + $0x39c] sm:$0xf0]  ;;  %v4913_v55 = vor.u32 %v5459_v47, %v4912_v46  ;;  %v4434_v46 = vld [vmem:[#allocation7 + $0xa8] sm:$0xf0]  ;;  %v5112_v47 = vld [vmem:[#allocation7 + $0x590] sm:$0xf] }
 0x197   :  { %3422 = vmatpush.bf16.msrb.mxu2 %v4609_v36  ;;  %3435 = vmatpush.bf16.msrb.mxu3 %v4613_v29  ;;  %v4810_v36 = vld [vmem:[#allocation7 + $0x3a0] sm:$0xf0]  ;;  %v4816_v29 = vld [vmem:[#allocation7 + $0x348] sm:$0xf]  ;;  %v4809_v62 = vor.u32 %v5434_v54, %v4808_v53 }
 0x198   :  { %v4813_v63 = vor.u32 %v5422_v58, %v4810_v36  ;;  %v5122_v58 = vld [vmem:[#allocation7 + $0x5f8] sm:$0xf0] }
 0x19a   :  { %3397 = vmatpush.bf16.msrb.mxu0 %v4505_v2  ;;  %3410 = vmatpush.bf16.msrb.mxu1 %v4509_v3  ;;  %v4817_v2 = vor.u32 %v5435_v59, %v4816_v29  ;;  %v4821_v3 = vor.u32 %v5423_v60, %v4818_v61  ;;  %v4437_v29 = vor.u32 %v5327_v45, %v4434_v46  ;;  %v5016_v61 = vld [vmem:[#allocation7 + $0x4d0] sm:$0xf] }
 0x19b   :  { %3423 = vmatpush.bf16.msrb.mxu2 %v4513_v33  ;;  %3436 = vmatpush.bf16.msrb.mxu3 %v4517_v7  ;;  %v5411_v33 = vld [vmem:[#allocation7 + $0x2e4] sm:$0xf0]  ;;  %v5399_v7 = vld [vmem:[#allocation7 + $0x28c] sm:$0xf]  ;;  %v5113_v59 = vor.u32 %v5508_v48, %v5112_v47  ;;  %v4632_v46 = vld [vmem:[#allocation7 + $0x1d0] sm:$0xf] }
 0x19c   :  { %v4721_v12 = vor.u32 %v5411_v33, %v4720_v6  ;;  %v4725_v13 = vor.u32 %v5399_v7, %v4722_v8  ;;  %v5026_v6 = vld [vmem:[#allocation7 + $0x538] sm:$0xf0]  ;;  %v4920_v8 = vld [vmem:[#allocation7 + $0x410] sm:$0xf] }
 0x19d   :  { %v5029_v51 = vor.u32 %v5473_v5, %v5026_v6  ;;  %v5388_v47 = vld [vmem:[#allocation7 + $0x22c] sm:$0xf0] }
 0x19e   :  { %3398 = vmatpush.bf16.msrb.mxu0 %v4409_v14  ;;  %3411 = vmatpush.bf16.msrb.mxu1 %v4413_v16  ;;  %v4624_v14 = vld [vmem:[#allocation7 + $0x1c8] sm:$0xf]  ;;  %v4440_v6 = vld [vmem:[#allocation7 + $0x50] sm:$0xf] }
 0x19f   :  { %3424 = vmatpush.bf16.msrb.mxu2 %v4417_v21  ;;  %3437 = vmatpush.bf16.msrb.mxu3 %v4421_v22  ;;  %v5387_v16 = vld [vmem:[#allocation7 + $0x224] sm:$0xf0]  ;;  %v4621_v21 = vor.u32 %v5374_v15, %v4618_v56  ;;  %v4520_v22 = vld [vmem:[#allocation7 + $0x100] sm:$0xf]  ;;  %v5461_v15 = vld [vmem:[#allocation7 + $0x474] sm:$0xf0] }
 0x1a0   :  { %v5449_v56 = vld [vmem:[#allocation7 + $0x41c] sm:$0xf] }
 0x1a1   :  { %3399 = vmatmul.bf16.vlgmr.msrb.gmra.mxu0 %v5717_v17  ;;  %3412 = vmatmul.bf16.vlgmr.msrb.gmra.mxu1 %v5717_v17 }
 0x1a2   :  { %3443 = vmatpush.bf16.msra.mxu0 %v5097_v23  ;;  %3456 = vmatpush.bf16.msra.mxu1 %v5101_v24  ;;  %v5362_v23 = vld [vmem:[#allocation7 + $0x15c] sm:$0xf0]  ;;  %v4625_v24 = vor.u32 %v5387_v16, %v4624_v14  ;;  %v4930_v14 = vld [vmem:[#allocation7 + $0x478] sm:$0xf0] }
 0x1a3   :  { %3469 = vmatpush.bf16.msra.mxu2 %v5105_v27  ;;  %3482 = vmatpush.bf16.msra.mxu3 %v5109_v28  ;;  %v4522_v27 = vld [vmem:[#allocation7 + $0x160] sm:$0xf0]  ;;  %v4528_v28 = vld [vmem:[#allocation7 + $0x108] sm:$0xf]  ;;  %v4521_v35 = vor.u32 %v5362_v23, %v4520_v22  ;;  %v4933_v22 = vor.u32 %v5449_v56, %v4930_v14  ;;  %v5424_v23 = vld [vmem:[#allocation7 + $0x354] sm:$0xf] }
 0x1a4   :  { %3425 = vmatmul.bf16.vlgmr.msrb.gmra.mxu2 %v5717_v17  ;;  %3438 = vmatmul.bf16.vlgmr.msrb.gmra.mxu3 %v5717_v17  ;;  %v4525_v37 = vor.u32 %v5350_v26, %v4522_v27  ;;  %v4529_v41 = vor.u32 %v5363_v30, %v4528_v28  ;;  %v5437_v26 = vld [vmem:[#allocation7 + $0x3b4] sm:$0xf0]  ;;  %v5425_v27 = vld [vmem:[#allocation7 + $0x35c] sm:$0xf] }
 0x1a5   :  { %v4834_v28 = vld [vmem:[#allocation7 + $0x3b8] sm:$0xf0] }
 0x1a6   :  { %3444 = vmatpush.bf16.msra.mxu0 %v5001_v38  ;;  %3457 = vmatpush.bf16.msra.mxu1 %v5005_v39  ;;  %v5338_v38 = vld [vmem:[#allocation7 + $0x9c] sm:$0xf0]  ;;  %v5326_v39 = vld [vmem:[#allocation7 + $0x44] sm:$0xf] }
 0x1a7   :  { %3470 = vmatpush.bf16.msra.mxu2 %v5009_v42  ;;  %3483 = vmatpush.bf16.msra.mxu3 %v5013_v43  ;;  %v4533_v42 = vor.u32 %v5351_v31, %v4530_v32  ;;  %v4432_v43 = vld [vmem:[#allocation7 + $0x48] sm:$0xf]  ;;  %v4425_v53 = vor.u32 %v5338_v38, %v4424_v34  ;;  %v4429_v54 = vor.u32 %v5326_v39, %v4426_v40  ;;  %v4728_v32 = vld [vmem:[#allocation7 + $0x290] sm:$0xf]  ;;  %v5400_v38 = vld [vmem:[#allocation7 + $0x294] sm:$0xf] }
 0x1a8   :  { %v4433_v36 = vor.u32 %v5339_v44, %v4432_v43  ;;  %v5412_v34 = vld [vmem:[#allocation7 + $0x2ec] sm:$0xf0]  ;;  %v4730_v39 = vld [vmem:[#allocation7 + $0x2f0] sm:$0xf0]  ;;  %v4736_v40 = vld [vmem:[#allocation7 + $0x298] sm:$0xf] }
 0x1a9   :  { %v4738_v43 = vld [vmem:[#allocation7 + $0x2f8] sm:$0xf0]  ;;  %v4729_v44 = vor.u32 %v5412_v34, %v4728_v32  ;;  %v4733_v45 = vor.u32 %v5400_v38, %v4730_v39 }
 0x1aa   :  { %3445 = vmatpush.bf16.msra.mxu0 %v4905_v50  ;;  %3458 = vmatpush.bf16.msra.mxu1 %v4909_v52  ;;  %v5114_v50 = vld [vmem:[#allocation7 + $0x5f0] sm:$0xf0]  ;;  %v5120_v52 = vld [vmem:[#allocation7 + $0x598] sm:$0xf] }
 0x1ab   :  { %3471 = vmatpush.bf16.msra.mxu2 %v4913_v55  ;;  %3484 = vmatpush.bf16.msra.mxu3 %v4917_v57  ;;  %v5509_v55 = vld [vmem:[#allocation7 + $0x5f4] sm:$0xf0]  ;;  %v5497_v57 = vld [vmem:[#allocation7 + $0x59c] sm:$0xf]  ;;  %v5117_v60 = vor.u32 %v5496_v49, %v5114_v50  ;;  %v5376_v50 = vld [vmem:[#allocation7 + $0x1d4] sm:$0xf] }
 0x1ac   :  { %v5125_v0 = vor.u32 %v5497_v57, %v5122_v58  ;;  %v4642_v57 = vld [vmem:[#allocation7 + $0x238] sm:$0xf0]  ;;  %v4633_v58 = vor.u32 %v5388_v47, %v4632_v46 }
 0x1ae   :  { %3446 = vmatpush.bf16.msra.mxu0 %v4809_v62  ;;  %3459 = vmatpush.bf16.msra.mxu1 %v4813_v63  ;;  %v5484_v62 = vld [vmem:[#allocation7 + $0x52c] sm:$0xf0]  ;;  %v5121_v63 = vor.u32 %v5509_v55, %v5120_v52  ;;  %v4634_v52 = vld [vmem:[#allocation7 + $0x230] sm:$0xf0]  ;;  %v5377_v55 = vld [vmem:[#allocation7 + $0x1dc] sm:$0xf] }
 0x1af   :  { %3472 = vmatpush.bf16.msra.mxu2 %v4817_v2  ;;  %3485 = vmatpush.bf16.msra.mxu3 %v4821_v3  ;;  %v5018_v2 = vld [vmem:[#allocation7 + $0x530] sm:$0xf0]  ;;  %v5024_v3 = vld [vmem:[#allocation7 + $0x4d8] sm:$0xf]  ;;  %v5017_v33 = vor.u32 %v5484_v62, %v5016_v61  ;;  %v4645_v61 = vor.u32 %v5377_v55, %v4642_v57 }
 0x1b0   :  { %v5021_v7 = vor.u32 %v5472_v1, %v5018_v2  ;;  %v5352_v62 = vld [vmem:[#allocation7 + $0x114] sm:$0xf]  ;;  %v5365_v1 = vld [vmem:[#allocation7 + $0x174] sm:$0xf0]  ;;  %v5353_v2 = vld [vmem:[#allocation7 + $0x11c] sm:$0xf] }
 0x1b2   :  { %3447 = vmatpush.bf16.msra.mxu0 %v4713_v9  ;;  %3460 = vmatpush.bf16.msra.mxu1 %v4717_v10  ;;  %v5460_v9 = vld [vmem:[#allocation7 + $0x46c] sm:$0xf0]  ;;  %v5025_v10 = vor.u32 %v5485_v4, %v5024_v3  ;;  %v4546_v3 = vld [vmem:[#allocation7 + $0x178] sm:$0xf0] }
 0x1b3   :  { %3473 = vmatpush.bf16.msra.mxu2 %v4721_v12  ;;  %3486 = vmatpush.bf16.msra.mxu3 %v4725_v13  ;;  %v4922_v12 = vld [vmem:[#allocation7 + $0x470] sm:$0xf0]  ;;  %v4928_v13 = vld [vmem:[#allocation7 + $0x418] sm:$0xf]  ;;  %v4921_v16 = vor.u32 %v5460_v9, %v4920_v8  ;;  %v4549_v8 = vor.u32 %v5353_v2, %v4546_v3 }
 0x1b4   :  { %v4925_v18 = vor.u32 %v5448_v11, %v4922_v12  ;;  %v5328_v9 = vld [vmem:[#allocation7 + $0x54] sm:$0xf]  ;;  %v5341_v11 = vld [vmem:[#allocation7 + $0xb4] sm:$0xf0]  ;;  %v5329_v12 = vld [vmem:[#allocation7 + $0x5c] sm:$0xf] }
 0x1b6   :  { %3448 = vmatpush.bf16.msra.mxu0 %v4617_v20  ;;  %3461 = vmatpush.bf16.msra.mxu1 %v4621_v21  ;;  %v5436_v20 = vld [vmem:[#allocation7 + $0x3ac] sm:$0xf0]  ;;  %v4929_v21 = vor.u32 %v5461_v15, %v4928_v13  ;;  %v4450_v13 = vld [vmem:[#allocation7 + $0xb8] sm:$0xf0] }
 0x1b7   :  { %3474 = vmatpush.bf16.msra.mxu2 %v4625_v24  ;;  %3487 = vmatpush.bf16.msra.mxu3 %v4629_v25  ;;  %v4826_v24 = vld [vmem:[#allocation7 + $0x3b0] sm:$0xf0]  ;;  %v4832_v25 = vld [vmem:[#allocation7 + $0x358] sm:$0xf]  ;;  %v4825_v30 = vor.u32 %v5436_v20, %v4824_v19 }
 0x1b8   :  { %v4829_v31 = vor.u32 %v5424_v23, %v4826_v24 }
 0x1ba   :  { %3449 = vmatpush.bf16.msra.mxu0 %v4521_v35  ;;  %3462 = vmatpush.bf16.msra.mxu1 %v4525_v37  ;;  %v4833_v35 = vor.u32 %v5437_v26, %v4832_v25  ;;  %v4837_v37 = vor.u32 %v5425_v27, %v4834_v28 }
 0x1bb   :  { %3475 = vmatpush.bf16.msra.mxu2 %v4529_v41  ;;  %3488 = vmatpush.bf16.msra.mxu3 %v4533_v42  ;;  %v5413_v41 = vld [vmem:[#allocation7 + $0x2f4] sm:$0xf0]  ;;  %v5401_v42 = vld [vmem:[#allocation7 + $0x29c] sm:$0xf] }
 0x1bc   :  { %v4737_v48 = vor.u32 %v5413_v41, %v4736_v40  ;;  %v4741_v49 = vor.u32 %v5401_v42, %v4738_v43 }
 0x1be   :  { %3450 = vmatpush.bf16.msra.mxu0 %v4425_v53  ;;  %3463 = vmatpush.bf16.msra.mxu1 %v4429_v54  ;;  %v4640_v53 = vld [vmem:[#allocation7 + $0x1d8] sm:$0xf] }
 0x1bf   :  { %3476 = vmatpush.bf16.msra.mxu2 %v4433_v36  ;;  %3489 = vmatpush.bf16.msra.mxu3 %v4437_v29  ;;  %v5389_v54 = vld [vmem:[#allocation7 + $0x234] sm:$0xf0]  ;;  %v4637_v36 = vor.u32 %v5376_v50, %v4634_v52  ;;  %v4536_v29 = vld [vmem:[#allocation7 + $0x110] sm:$0xf]  ;;  %v2222_v52 = vld [vmem:[#allocation8 + $0x8] sm:$0xff] }
 0x1c0   :  { %v2235_v55 = vperm.slane %v2222_v52, 0  ;;  %v2236_v57 = vperm.slane %v2222_v52, 1 }
 0x1c1   :  { %3451 = vmatmul.bf16.vlgmr.msra.gmra.mxu0 %v5717_v17  ;;  %3464 = vmatmul.bf16.vlgmr.msra.gmra.mxu1 %v5717_v17 }
 0x1c2   :  { %3495 = vmatpush.bf16.msrb.mxu0 %v5113_v59  ;;  %3508 = vmatpush.bf16.msrb.mxu1 %v5117_v60  ;;  %v5364_v59 = vld [vmem:[#allocation7 + $0x16c] sm:$0xf0]  ;;  %v4641_v60 = vor.u32 %v5389_v54, %v4640_v53 }
 0x1c3   :  { %3521 = vmatpush.bf16.msrb.mxu2 %v5121_v63  ;;  %3534 = vmatpush.bf16.msrb.mxu3 %v5125_v0  ;;  %v4538_v63 = vld [vmem:[#allocation7 + $0x170] sm:$0xf0]  ;;  %v4544_v0 = vld [vmem:[#allocation7 + $0x118] sm:$0xf]  ;;  %v4537_v4 = vor.u32 %v5364_v59, %v4536_v29 }
 0x1c4   :  { %3477 = vmatmul.bf16.vlgmr.msra.gmra.mxu2 %v5717_v17  ;;  %3490 = vmatmul.bf16.vlgmr.msra.gmra.mxu3 %v5717_v17  ;;  %v4541_v5 = vor.u32 %v5352_v62, %v4538_v63 }
 0x1c6   :  { %3496 = vmatpush.bf16.msrb.mxu0 %v5017_v33  ;;  %3509 = vmatpush.bf16.msrb.mxu1 %v5021_v7  ;;  %v5340_v33 = vld [vmem:[#allocation7 + $0xac] sm:$0xf0]  ;;  %v4545_v7 = vor.u32 %v5365_v1, %v4544_v0 }
 0x1c7   :  { %3522 = vmatpush.bf16.msrb.mxu2 %v5025_v10  ;;  %3535 = vmatpush.bf16.msrb.mxu3 %v5029_v51  ;;  %v4442_v10 = vld [vmem:[#allocation7 + $0xb0] sm:$0xf0]  ;;  %v4448_v51 = vld [vmem:[#allocation7 + $0x58] sm:$0xf]  ;;  %v4441_v15 = vor.u32 %v5340_v33, %v4440_v6  ;;  %v2239_v6 = vperm.slane %v2222_v52, 4  ;;  %v2240_v33 = vperm.slane %v2222_v52, 5 }
 0x1c8   :  { %v4445_v56 = vor.u32 %v5328_v9, %v4442_v10  ;;  %v4449_v14 = vor.u32 %v5341_v11, %v4448_v51  ;;  %v2241_v51 = vperm.slane %v2222_v52, 6  ;;  %v2242_v11 = vperm.slane %v2222_v52, 7 }
 0x1ca   :  { %3497 = vmatpush.bf16.msrb.mxu0 %v4921_v16  ;;  %3510 = vmatpush.bf16.msrb.mxu1 %v4925_v18  ;;  %v4453_v16 = vor.u32 %v5329_v12, %v4450_v13  ;;  %v2221_v18 = vld [vmem:[#allocation8] sm:$0xff] }
 0x1cb   :  { %3523 = vmatpush.bf16.msrb.mxu2 %v4929_v21  ;;  %3536 = vmatpush.bf16.msrb.mxu3 %v4933_v22  ;;  %v2227_v19 = vperm.slane %v2221_v18, 0  ;;  %v2228_v20 = vperm.slane %v2221_v18, 1  ;;  %v2229_v25 = vperm.slane %v2221_v18, 2  ;;  %v2230_v26 = vperm.slane %v2221_v18, 3 }
 0x1cc   :  { %v2233_v43 = vperm.slane %v2221_v18, 6 }
 0x1ce   :  { %3498 = vmatpush.bf16.msrb.mxu0 %v4825_v30  ;;  %3511 = vmatpush.bf16.msrb.mxu1 %v4829_v31 }
 0x1cf   :  { %3524 = vmatpush.bf16.msrb.mxu2 %v4833_v35  ;;  %3537 = vmatpush.bf16.msrb.mxu3 %v4837_v37  ;;  %v2231_v35 = vperm.slane %v2221_v18, 4  ;;  %v2232_v37 = vperm.slane %v2221_v18, 5 }
 0x1d2   :  { %3499 = vmatpush.bf16.msrb.mxu0 %v4729_v44  ;;  %3512 = vmatpush.bf16.msrb.mxu1 %v4733_v45  ;;  %v2234_v44 = vperm.slane %v2221_v18, 7 }
 0x1d3   :  { %3525 = vmatpush.bf16.msrb.mxu2 %v4737_v48  ;;  %3538 = vmatpush.bf16.msrb.mxu3 %v4741_v49 }
 0x1d6   :  { %3500 = vmatpush.bf16.msrb.mxu0 %v4633_v58  ;;  %3513 = vmatpush.bf16.msrb.mxu1 %v4637_v36 }
 0x1d7   :  { %3526 = vmatpush.bf16.msrb.mxu2 %v4641_v60  ;;  %3539 = vmatpush.bf16.msrb.mxu3 %v4645_v61  ;;  %v2237_v60 = vperm.slane %v2222_v52, 2  ;;  %v2238_v61 = vperm.slane %v2222_v52, 3 }
 0x1da   :  { %3501 = vmatpush.bf16.msrb.mxu0 %v4537_v4  ;;  %3514 = vmatpush.bf16.msrb.mxu1 %v4541_v5 }
 0x1db   :  { %3527 = vmatpush.bf16.msrb.mxu2 %v4545_v7  ;;  %3540 = vmatpush.bf16.msrb.mxu3 %v4549_v8 }
 0x1dd   :  { %v3244_v21 = vpop.f32.mrf.mxu0  ;;  %v3257_v22 = vpop.f32.mrf.mxu1 }
 0x1de   :  { %3502 = vmatpush.bf16.msrb.mxu0 %v4441_v15  ;;  %3515 = vmatpush.bf16.msrb.mxu1 %v4445_v56  ;;  %v3245_v23 = vadd.f32 %v3244_v21, %v2227_v19  ;;  %v3258_v24 = vadd.f32 %v3257_v22, %v2228_v20  ;;  %v2223_v20 = vld [vmem:[#allocation8 + $0x10] sm:$0xff] }
 0x1df   :  { %3528 = vmatpush.bf16.msrb.mxu2 %v4449_v14  ;;  %3541 = vmatpush.bf16.msrb.mxu3 %v4453_v16  ;;  %v2243_v21 = vperm.slane %v2223_v20, 0  ;;  %v2244_v22 = vperm.slane %v2223_v20, 1 }
 0x1e0   :  { %3547 = vst [vmem:[#allocation10] sm:$0xff] %v3245_v23 }
 0x1e1   :  { %3503 = vmatmul.bf16.vlgmr.msrb.gmra.mxu0 %v5717_v17  ;;  %3516 = vmatmul.bf16.vlgmr.msrb.gmra.mxu1 %v5717_v17  ;;  %3548 = vst [vmem:[#allocation10 + $0x8] sm:$0xff] %v3258_v24 }
 0x1e2   :  { %3529 = vmatmul.bf16.vlgmr.msrb.gmra.mxu2 %v5717_v17  ;;  %3542 = vmatmul.bf16.vlgmr.msrb.gmra.mxu3 %v5717_v17 }
 0x1e4   :  { %v3270_v27 = vpop.f32.mrf.mxu2  ;;  %v3283_v28 = vpop.f32.mrf.mxu3 }
 0x1e5   :  { %v3271_v30 = vadd.f32 %v3270_v27, %v2229_v25  ;;  %v3284_v31 = vadd.f32 %v3283_v28, %v2230_v26  ;;  %v3246_v32 = vpop.f32.mrf.mxu0  ;;  %v3259_v34 = vpop.f32.mrf.mxu1  ;;  %v2245_v27 = vperm.slane %v2223_v20, 2  ;;  %v2246_v28 = vperm.slane %v2223_v20, 3 }
 0x1e7   :  { %3549 = vst [vmem:[#allocation10 + $0x10] sm:$0xff] %v3271_v30 }
 0x1e8   :  { %3550 = vst [vmem:[#allocation10 + $0x18] sm:$0xff] %v3284_v31 }
 0x1ec   :  { %v3272_v38 = vpop.f32.mrf.mxu2  ;;  %v3285_v17 = vpop.f32.mrf.mxu3 }
 0x1ed   :  { %v3296_v39 = vpop.f32.mrf.mxu0  ;;  %v3309_v40 = vpop.f32.mrf.mxu1 }
 0x1ee   :  { %v3297_v41 = vadd.f32 %v3296_v39, %v2231_v35  ;;  %v3310_v42 = vadd.f32 %v3309_v40, %v2232_v37  ;;  %v2247_v39 = vperm.slane %v2223_v20, 4  ;;  %v2248_v40 = vperm.slane %v2223_v20, 5 }
 0x1f0   :  { %3551 = vst [vmem:[#allocation10 + $0x20] sm:$0xff] %v3297_v41 }
 0x1f1   :  { %3552 = vst [vmem:[#allocation10 + $0x28] sm:$0xff] %v3310_v42 }
 0x1f4   :  { %v3322_v45 = vpop.f32.mrf.mxu2  ;;  %v3335_v46 = vpop.f32.mrf.mxu3 }
 0x1f5   :  { %v3323_v47 = vadd.f32 %v3322_v45, %v2233_v43  ;;  %v3336_v48 = vadd.f32 %v3335_v46, %v2234_v44  ;;  %v3298_v49 = vpop.f32.mrf.mxu0  ;;  %v3311_v50 = vpop.f32.mrf.mxu1  ;;  %v2249_v45 = vperm.slane %v2223_v20, 6  ;;  %v2250_v46 = vperm.slane %v2223_v20, 7 }
 0x1f7   :  { %3553 = vst [vmem:[#allocation10 + $0x30] sm:$0xff] %v3323_v47 }
 0x1f8   :  { %3554 = vst [vmem:[#allocation10 + $0x38] sm:$0xff] %v3336_v48 }
 0x1fc   :  { %v3324_v53 = vpop.f32.mrf.mxu2  ;;  %v3337_v54 = vpop.f32.mrf.mxu3 }
 0x1fe   :  { %v3348_v58 = vpop.f32.mrf.mxu0  ;;  %v3361_v36 = vpop.f32.mrf.mxu1 }
 0x1ff   :  { %v3349_v29 = vadd.f32 %v3348_v58, %v2235_v55  ;;  %v3362_v59 = vadd.f32 %v3361_v36, %v2236_v57 }
 0x201   :  { %3555 = vst [vmem:[#allocation10 + $0x40] sm:$0xff] %v3349_v29 }
 0x202   :  { %3556 = vst [vmem:[#allocation10 + $0x48] sm:$0xff] %v3362_v59 }
 0x206   :  { %v3350_v2 = vpop.f32.mrf.mxu0  ;;  %v3363_v3 = vpop.f32.mrf.mxu1 }
 0x207   :  { %v3374_v62 = vpop.f32.mrf.mxu2  ;;  %v3387_v63 = vpop.f32.mrf.mxu3 }
 0x208   :  { %v3375_v0 = vadd.f32 %v3374_v62, %v2237_v60  ;;  %v3388_v1 = vadd.f32 %v3387_v63, %v2238_v61 }
 0x20a   :  { %3557 = vst [vmem:[#allocation10 + $0x50] sm:$0xff] %v3375_v0 }
 0x20b   :  { %3558 = vst [vmem:[#allocation10 + $0x58] sm:$0xff] %v3388_v1 }
 0x20f   :  { %v3376_v4 = vpop.f32.mrf.mxu2  ;;  %v3389_v5 = vpop.f32.mrf.mxu3 }
 0x21e   :  { %v3400_v7 = vpop.f32.mrf.mxu0  ;;  %v3413_v8 = vpop.f32.mrf.mxu1 }
 0x21f   :  { %v3401_v9 = vadd.f32 %v3400_v7, %v2239_v6  ;;  %v3414_v10 = vadd.f32 %v3413_v8, %v2240_v33 }
 0x221   :  { %3559 = vst [vmem:[#allocation10 + $0x60] sm:$0xff] %v3401_v9 }
 0x222   :  { %3560 = vst [vmem:[#allocation10 + $0x68] sm:$0xff] %v3414_v10 }
 0x226   :  { %v3402_v14 = vpop.f32.mrf.mxu0  ;;  %v3415_v16 = vpop.f32.mrf.mxu1 }
 0x227   :  { %v3426_v12 = vpop.f32.mrf.mxu2  ;;  %v3439_v13 = vpop.f32.mrf.mxu3 }
 0x228   :  { %v3427_v15 = vadd.f32 %v3426_v12, %v2241_v51  ;;  %v3440_v56 = vadd.f32 %v3439_v13, %v2242_v11 }
 0x22a   :  { %3561 = vst [vmem:[#allocation10 + $0x70] sm:$0xff] %v3427_v15 }
 0x22b   :  { %3562 = vst [vmem:[#allocation10 + $0x78] sm:$0xff] %v3440_v56 }
 0x22f   :  { %v3428_v18 = vpop.f32.mrf.mxu2  ;;  %v3441_v19 = vpop.f32.mrf.mxu3 }
 0x23e   :  { %v3452_v23 = vpop.f32.mrf.mxu0  ;;  %v3465_v24 = vpop.f32.mrf.mxu1 }
 0x23f   :  { %v3453_v25 = vadd.f32 %v3452_v23, %v2243_v21  ;;  %v3466_v26 = vadd.f32 %v3465_v24, %v2244_v22 }
 0x241   :  { %3563 = vst [vmem:[#allocation10 + $0x80] sm:$0xff] %v3453_v25 }
 0x242   :  { %3564 = vst [vmem:[#allocation10 + $0x88] sm:$0xff] %v3466_v26 }
 0x246   :  { %v3454_v35 = vpop.f32.mrf.mxu0  ;;  %v3467_v37 = vpop.f32.mrf.mxu1 }
 0x247   :  { %v3478_v30 = vpop.f32.mrf.mxu2  ;;  %v3491_v31 = vpop.f32.mrf.mxu3 }
 0x248   :  { %v3479_v32 = vadd.f32 %v3478_v30, %v2245_v27  ;;  %v3492_v34 = vadd.f32 %v3491_v31, %v2246_v28 }
 0x24a   :  { %3565 = vst [vmem:[#allocation10 + $0x90] sm:$0xff] %v3479_v32 }
 0x24b   :  { %3566 = vst [vmem:[#allocation10 + $0x98] sm:$0xff] %v3492_v34 }
 0x24f   :  { %v3480_v38 = vpop.f32.mrf.mxu2  ;;  %v3493_v17 = vpop.f32.mrf.mxu3 }
 0x25e   :  { %v3504_v41 = vpop.f32.mrf.mxu0  ;;  %v3517_v42 = vpop.f32.mrf.mxu1 }
 0x25f   :  { %v3505_v43 = vadd.f32 %v3504_v41, %v2247_v39  ;;  %v3518_v44 = vadd.f32 %v3517_v42, %v2248_v40 }
 0x261   :  { %3567 = vst [vmem:[#allocation10 + $0xa0] sm:$0xff] %v3505_v43 }
 0x262   :  { %3568 = vst [vmem:[#allocation10 + $0xa8] sm:$0xff] %v3518_v44 }
 0x265   :  { %v3530_v47 = vpop.f32.mrf.mxu2  ;;  %v3543_v48 = vpop.f32.mrf.mxu3 }
 0x266   :  { %v3531_v49 = vadd.f32 %v3530_v47, %v2249_v45  ;;  %v3544_v50 = vadd.f32 %v3543_v48, %v2250_v46  ;;  %v3506_v52 = vpop.f32.mrf.mxu0  ;;  %v3519_v53 = vpop.f32.mrf.mxu1 }
 0x268   :  { %3569 = vst [vmem:[#allocation10 + $0xb0] sm:$0xff] %v3531_v49 }
 0x269   :  { %3570 = vst [vmem:[#allocation10 + $0xb8] sm:$0xff] %v3544_v50 }
 0x26a   :  { %3581 = dma.vmem_to_hbm [thread:$0]  %s3577_s15, 3072, %s3579_s18, [#allocation4]  }
 0x26d   :  { %v3532_v54 = vpop.f32.mrf.mxu2  ;;  %v3545_v55 = vpop.f32.mrf.mxu3 }
 0x26e   :  { %5646 = dma.done.wait [#allocation4], 3072  }
 0x26f   :  { %5647 = vsyncadd [#allocation4], 4294964224 }
 0x270   :  { %3586 = vsyncpa [#allocation3], 1 }
 0x271   :  { %3587 = vsyncpa [#allocation6], 1 }
 0x272   :  { %3588 = vsyncpa [#allocation9], 1 }
 0x273   :  { %3589 = vsyncpa [#allocation4], 1 }

</bundles_post_ra>
